<compile_context>
chip_gen: v6e
topology: v6e:2x2x1
jax: 0.10.0
libtpu: 0.0.40
codegen_flags: <defaults>
</compile_context>

<pallas_src>
import functools
import math

import jax
import jax.numpy as jnp
from jax.experimental import pallas as pl
from jax.experimental.pallas import tpu as pltpu

_BN_EPS = 1e-5
_LANE = 128
_SUBLANE = 8
_TM_MAX = 512            # im2col rows per grid step (sized well below VMEM)
_VMEM_LIMIT = 32 * 1024 * 1024


def _round_up(x, m):
    return ((x + m - 1) // m) * m


# --------------------------------------------------------------------------- #
# Kernel 1: conv-as-matmul (bf16 MXU) + bias + ReLU + per-tile BN partial stats
# --------------------------------------------------------------------------- #
def _conv_relu_stats_kernel(p_ref, w_ref, b_ref, y_ref, stats_ref, *, m_true, tm):
    # p_ref: (tm, Kpad) bf16   w_ref: (Kpad, Cpad) bf16   b_ref: (1, Cpad) f32
    # y_ref: (tm, Cpad) f32    stats_ref: (1, 8, Cpad) f32 (rows 0/1 = sum/sumsq)
    y = jnp.dot(p_ref[...], w_ref[...], preferred_element_type=jnp.float32)
    y = jnp.maximum(y + b_ref[...], 0.0)              # bias + ReLU (ReLU before BN)
    y_ref[...] = y

    if m_true % tm != 0:                               # mask padded rows (static)
        row = jax.lax.broadcasted_iota(jnp.int32, (tm, 1), 0) + pl.program_id(0) * tm
        y = jnp.where(row < m_true, y, 0.0)

    s = jnp.sum(y, axis=0, keepdims=True)              # (1, Cpad)
    ss = jnp.sum(y * y, axis=0, keepdims=True)         # (1, Cpad)  single pass
    pad = jnp.zeros((_SUBLANE - 2, s.shape[-1]), jnp.float32)
    stats_ref[0] = jnp.concatenate([s, ss, pad], axis=0)


# --------------------------------------------------------------------------- #
# Kernel 2: fused BatchNorm scale/shift (y * scale + shift), tiled over M
# --------------------------------------------------------------------------- #
def _scale_shift_kernel(y_ref, scale_ref, shift_ref, o_ref):
    o_ref[...] = (y_ref[...] * scale_ref[...] + shift_ref[...]).astype(o_ref.dtype)


# --------------------------------------------------------------------------- #
# JAX glue: im2col (patch extraction) in NHWC, channel-minor column order     #
# --------------------------------------------------------------------------- #
def _im2col_nhwc(x, k, s, p, compute_dtype):
    N, H, W, C = x.shape
    xp = jnp.pad(x.astype(compute_dtype), ((0, 0), (p, p), (p, p), (0, 0)))
    Ho = (H + 2 * p - k) // s + 1
    Wo = (W + 2 * p - k) // s + 1
    cols = []
    for di in range(k):
        for dj in range(k):
            cols.append(xp[:, di:di + s * Ho:s, dj:dj + s * Wo:s, :])  # (N,Ho,Wo,C)
    patches = jnp.concatenate(cols, axis=-1)       # column index = (di*k+dj)*C + c
    return patches.reshape(N * Ho * Wo, k * k * C), Ho, Wo


def _conv_relu_bn_layer(x_nhwc, layer):
    k, s, cout = layer["k"], layer["s"], layer["cout"]
    w_mat, bias = layer["w_mat"], layer["bias"]        # (Kpad,Cpad) bf16, (1,Cpad) f32
    gamma, beta = layer["gamma"], layer["beta"]        # (Cpad,) f32 each
    kpad, cpad = w_mat.shape

    N, H, W, Cin = x_nhwc.shape
    p = (k - 1) // 2
    patches, Ho, Wo = _im2col_nhwc(x_nhwc, k, s, p, w_mat.dtype)
    M, K = patches.shape

    tm = min(_TM_MAX, _round_up(M, _SUBLANE))
    m_pad = _round_up(M, tm)
    grid_m = m_pad // tm
    # zero-pad rows (masked out of the stats) and K columns (no effect on matmul)
    patches = jnp.pad(patches, ((0, m_pad - M), (0, kpad - K)))

    flops = 2 * m_pad * kpad * cpad
    bytes_accessed = (m_pad * kpad * 2 + kpad * cpad * 2      # bf16 inputs
                      + m_pad * cpad * 4 + grid_m * _SUBLANE * cpad * 4)

    kern = functools.partial(_conv_relu_stats_kernel, m_true=M, tm=tm)
    y, stats = pl.pallas_call(
        kern,
        out_shape=(jax.ShapeDtypeStruct((m_pad, cpad), jnp.float32),
                   jax.ShapeDtypeStruct((grid_m, _SUBLANE, cpad), jnp.float32)),
        grid=(grid_m,),
        in_specs=[pl.BlockSpec((tm, kpad), lambda i: (i, 0)),
                  pl.BlockSpec((kpad, cpad), lambda i: (0, 0)),   # weights resident
                  pl.BlockSpec((1, cpad), lambda i: (0, 0))],
        out_specs=(pl.BlockSpec((tm, cpad), lambda i: (i, 0)),
                   pl.BlockSpec((1, _SUBLANE, cpad), lambda i: (i, 0, 0))),
        compiler_params=pltpu.CompilerParams(
            dimension_semantics=("parallel",),
            vmem_limit_bytes=_VMEM_LIMIT),
        cost_estimate=pl.CostEstimate(flops=flops, transcendentals=0,
                                      bytes_accessed=bytes_accessed),
    )(patches, w_mat, bias)

    # --- finalize BatchNorm statistics (tiny, per-channel) in JAX ------------
    sums = jnp.sum(stats[:, 0, :], axis=0)            # (cpad,)
    sumsq = jnp.sum(stats[:, 1, :], axis=0)
    mean = sums / M                                    # true (unpadded) M
    var = jnp.maximum(sumsq / M - mean * mean, 0.0)    # biased variance
    scale = gamma * jax.lax.rsqrt(var + _BN_EPS)       # fused gamma * inv_std
    shift = beta - mean * scale
    scale = scale.reshape(1, cpad)
    shift = shift.reshape(1, cpad)

    out = pl.pallas_call(
        _scale_shift_kernel,
        out_shape=jax.ShapeDtypeStruct((m_pad, cpad), jnp.float32),
        grid=(grid_m,),
        in_specs=[pl.BlockSpec((tm, cpad), lambda i: (i, 0)),
                  pl.BlockSpec((1, cpad), lambda i: (0, 0)),
                  pl.BlockSpec((1, cpad), lambda i: (0, 0))],
        out_specs=pl.BlockSpec((tm, cpad), lambda i: (i, 0)),
        compiler_params=pltpu.CompilerParams(
            dimension_semantics=("parallel",),
            vmem_limit_bytes=_VMEM_LIMIT),
    )(y, scale, shift)

    return out[:M, :cout].reshape(N, Ho, Wo, cout)


# --------------------------------------------------------------------------- #
# Module wrapper                                                              #
# --------------------------------------------------------------------------- #
class ConvolutionalBlock:
    def __init__(self, input_shape, convolutional_filters, convolutional_kernels,
                 convolutional_strides, key, matmul_dtype=jnp.bfloat16):
        self.input_shape = tuple(input_shape)          # (C, H, W)
        self.filters = tuple(convolutional_filters)
        self.kernels = tuple(convolutional_kernels)
        self.strides = tuple(convolutional_strides)
        self.num_conv_layers = len(self.filters)

        self.params = []    # raw PyTorch-layout params (for the reference check)
        self.layers = []    # kernel-ready padded / reshaped / cast params
        in_channels = self.input_shape[0]
        for i in range(self.num_conv_layers):
            cout, k, s = self.filters[i], self.kernels[i], self.strides[i]
            key, kw, kb = jax.random.split(key, 3)
            fan_in = in_channels * k * k
            bound = 1.0 / math.sqrt(fan_in)
            w = jax.random.uniform(kw, (cout, in_channels, k, k), jnp.float32,
                                   -bound, bound)
            b = jax.random.uniform(kb, (cout,), jnp.float32, -bound, bound)
            gamma = jnp.ones((cout,), jnp.float32)     # BatchNorm2d defaults
            beta = jnp.zeros((cout,), jnp.float32)
            self.params.append((w, b, gamma, beta))

            # Precompute lane-dense kernel operands once (not per forward call).
            K = k * k * in_channels
            kpad = _round_up(K, _LANE)
            cpad = _round_up(cout, _LANE)
            w_mat = jnp.transpose(w, (2, 3, 1, 0)).reshape(K, cout)
            w_mat = jnp.pad(w_mat, ((0, kpad - K), (0, cpad - cout)))
            self.layers.append(dict(
                w_mat=w_mat.astype(matmul_dtype),
                bias=jnp.pad(b, (0, cpad - cout)).reshape(1, cpad),
                gamma=jnp.pad(gamma, (0, cpad - cout), constant_values=1.0),
                beta=jnp.pad(beta, (0, cpad - cout)),
                cout=cout, k=k, s=s))
            in_channels = cout

    @functools.partial(jax.jit, static_argnums=0)
    def forward(self, x_nchw):
        x = jnp.transpose(x_nchw, (0, 2, 3, 1))        # NCHW -> NHWC (lane-dense C)
        for layer in self.layers:
            x = _conv_relu_bn_layer(x, layer)
        return jnp.transpose(x, (0, 3, 1, 2))          # NHWC -> NCHW

    __call__ = forward


# --------------------------------------------------------------------------- #
# Pure-JAX f32 reference (PyTorch semantics) for a sanity check               #
# --------------------------------------------------------------------------- #
def _reference_forward(block, x_nchw):
    x = x_nchw
    for i in range(block.num_conv_layers):
        w, b, gamma, beta = block.params[i]
        k, s = block.kernels[i], block.strides[i]
        p = (k - 1) // 2
        y = jax.lax.conv_general_dilated(
            x, w, window_strides=(s, s), padding=((p, p), (p, p)),
            dimension_numbers=("NCHW", "OIHW", "NCHW"))
        y = jnp.maximum(y + b.reshape(1, -1, 1, 1), 0.0)
        mean = jnp.mean(y, axis=(0, 2, 3), keepdims=True)
        var = jnp.mean((y - mean) ** 2, axis=(0, 2, 3), keepdims=True)
        y = (y - mean) * jax.lax.rsqrt(var + _BN_EPS)
        x = y * gamma.reshape(1, -1, 1, 1) + beta.reshape(1, -1, 1, 1)
    return x


if __name__ == "__main__":
    key = jax.random.PRNGKey(0)
    key, kx, kp = jax.random.split(key, 3)

    # Small config: input (C,H,W)=(4,32,32); two conv layers (8, stride 1) then
    # (16, stride 2).  Layer 1 runs a 4-step M grid, layer 2 a single tile.
    input_shape = (4, 32, 32)
    block = ConvolutionalBlock(
        input_shape=input_shape,
        convolutional_filters=(8, 16),
        convolutional_kernels=(3, 3),
        convolutional_strides=(1, 2),
        key=kp,
    )

    x = jax.random.normal(kx, (2, *input_shape), jnp.float32)   # NCHW

    out = jax.block_until_ready(block(x))
    assert out.shape == (2, 16, 16, 16), out.shape

    ref = _reference_forward(block, x)
    max_err = float(jnp.max(jnp.abs(out - ref)))
    mean_err = float(jnp.mean(jnp.abs(out - ref)))
    # bf16 MXU inputs -> loosened tolerance vs f32 reference (outputs are ~unit scale).
    assert max_err < 0.1, (max_err, mean_err)
    assert mean_err < 0.02, (max_err, mean_err)

    print("KERNEL_OK")
</pallas_src>

<mosaic_0001>
module attributes {stable_mosaic.version = 11 : i64} {
  func.func @_conv_relu_stats_kernel(%arg0: i32, %arg1: memref<512x128xbf16, #tpu.memory_space<vmem>>, %arg2: memref<128x128xbf16, #tpu.memory_space<vmem>>, %arg3: memref<1x128xf32, #tpu.memory_space<vmem>>, %arg4: memref<512x128xf32, #tpu.memory_space<vmem>>, %arg5: memref<1x8x128xf32, #tpu.memory_space<vmem>>) attributes {dimension_semantics = [#tpu.dimension_semantics<parallel>], iteration_bounds = array<i64: 4>, scalar_prefetch = 0 : i64, scratch_operands = 0 : i64, tpu.core_type = #tpu.core_type<tc>, window_params = [{transform_indices = @transform_0, window_bounds = array<i64: 512, 128>}, {pipeline_mode = #tpu.pipeline_mode<synchronous>, transform_indices = @transform_1, window_bounds = array<i64: 128, 128>}, {pipeline_mode = #tpu.pipeline_mode<synchronous>, transform_indices = @transform_2, window_bounds = array<i64: 1, 128>}, {transform_indices = @transform_3, window_bounds = array<i64: 512, 128>}, {transform_indices = @transform_4, window_bounds = array<i64: 1, 8, 128>}]} {
    %c0 = arith.constant 0 : index
    %c0_0 = arith.constant 0 : index
    %0 = vector.load %arg1[%c0, %c0_0] : memref<512x128xbf16, #tpu.memory_space<vmem>>, vector<512x128xbf16>
    %c0_1 = arith.constant 0 : index
    %c0_2 = arith.constant 0 : index
    %1 = vector.load %arg2[%c0_1, %c0_2] : memref<128x128xbf16, #tpu.memory_space<vmem>>, vector<128x128xbf16>
    %cst = arith.constant dense<0.000000e+00> : vector<512x128xf32>
    %2 = tpu.matmul %0, %1, %cst {dimension_numbers = #tpu.dot_dimension_numbers<[1], [0], [0], [1], [0, 0, 1, 1], [], []>} : vector<512x128xbf16>, vector<128x128xbf16>, vector<512x128xf32> -> vector<512x128xf32>
    %c0_3 = arith.constant 0 : index
    %c0_4 = arith.constant 0 : index
    %3 = vector.load %arg3[%c0_3, %c0_4] : memref<1x128xf32, #tpu.memory_space<vmem>>, vector<1x128xf32>
    %4 = vector.broadcast %3 : vector<1x128xf32> to vector<512x128xf32>
    %5 = arith.addf %2, %4 : vector<512x128xf32>
    %cst_5 = arith.constant 0.000000e+00 : f32
    %6 = vector.broadcast %cst_5 : f32 to vector<512x128xf32>
    %7 = arith.maximumf %5, %6 : vector<512x128xf32>
    %c0_6 = arith.constant 0 : index
    %c0_7 = arith.constant 0 : index
    %8 = vector.load %arg4[%c0_6, %c0_7] : memref<512x128xf32, #tpu.memory_space<vmem>>, vector<512x128xf32>
    tpu.vector_store %arg4[%c0_6, %c0_7], %7 {strides = array<i32>} : memref<512x128xf32, #tpu.memory_space<vmem>>, vector<512x128xf32>,
    %cst_8 = arith.constant dense<0.000000e+00> : vector<128xf32>
    %9 = vector.multi_reduction <add>, %7, %cst_8 [0] : vector<512x128xf32> to vector<128xf32>
    %10 = vector.shape_cast %9 : vector<128xf32> to vector<1x128xf32>
    %11 = arith.mulf %7, %7 : vector<512x128xf32>
    %cst_9 = arith.constant dense<0.000000e+00> : vector<128xf32>
    %12 = vector.multi_reduction <add>, %11, %cst_9 [0] : vector<512x128xf32> to vector<128xf32>
    %13 = vector.shape_cast %12 : vector<128xf32> to vector<1x128xf32>
    %cst_10 = arith.constant 0.000000e+00 : f32
    %14 = vector.broadcast %cst_10 : f32 to vector<6x128xf32>
    %15 = tpu.concatenate %10, %13, %14 in 0 : vector<1x128xf32>, vector<1x128xf32>, vector<6x128xf32> -> vector<8x128xf32>
    %c0_11 = arith.constant 0 : index
    %c0_12 = arith.constant 0 : index
    %c0_13 = arith.constant 0 : index
    %16 = vector.load %arg5[%c0_11, %c0_12, %c0_13] : memref<1x8x128xf32, #tpu.memory_space<vmem>>, vector<1x8x128xf32>
    %17 = vector.shape_cast %16 : vector<1x8x128xf32> to vector<8x128xf32>
    %18 = vector.shape_cast %15 : vector<8x128xf32> to vector<1x8x128xf32>
    tpu.vector_store %arg5[%c0_11, %c0_12, %c0_13], %18 {strides = array<i32>} : memref<1x8x128xf32, #tpu.memory_space<vmem>>, vector<1x8x128xf32>,
    return
  }
  func.func @transform_0(%arg0: i32) -> (i32, i32) {
    %c0_i32 = arith.constant 0 : i32
    %c0_i32_0 = arith.constant 0 : i32
    return %arg0, %c0_i32 : i32, i32
  }
  func.func @transform_1(%arg0: i32) -> (i32, i32) {
    %c0_i32 = arith.constant 0 : i32
    %c0_i32_0 = arith.constant 0 : i32
    %c0_i32_1 = arith.constant 0 : i32
    return %c0_i32, %c0_i32_0 : i32, i32
  }
  func.func @transform_2(%arg0: i32) -> (i32, i32) {
    %c0_i32 = arith.constant 0 : i32
    %c0_i32_0 = arith.constant 0 : i32
    %c0_i32_1 = arith.constant 0 : i32
    return %c0_i32, %c0_i32_0 : i32, i32
  }
  func.func @transform_3(%arg0: i32) -> (i32, i32) {
    %c0_i32 = arith.constant 0 : i32
    %c0_i32_0 = arith.constant 0 : i32
    return %arg0, %c0_i32 : i32, i32
  }
  func.func @transform_4(%arg0: i32) -> (i32, i32, i32) {
    %c0_i32 = arith.constant 0 : i32
    %c0_i32_0 = arith.constant 0 : i32
    %c0_i32_1 = arith.constant 0 : i32
    return %arg0, %c0_i32, %c0_i32_0 : i32, i32, i32
  }
}

module attributes {stable_mosaic.version = 11 : i64} {
  func.func @_scale_shift_kernel(%arg0: i32, %arg1: memref<512x128xf32, #tpu.memory_space<vmem>>, %arg2: memref<1x128xf32, #tpu.memory_space<vmem>>, %arg3: memref<1x128xf32, #tpu.memory_space<vmem>>, %arg4: memref<512x128xf32, #tpu.memory_space<vmem>>) attributes {dimension_semantics = [#tpu.dimension_semantics<parallel>], iteration_bounds = array<i64: 4>, scalar_prefetch = 0 : i64, scratch_operands = 0 : i64, tpu.core_type = #tpu.core_type<tc>, window_params = [{transform_indices = @transform_0, window_bounds = array<i64: 512, 128>}, {pipeline_mode = #tpu.pipeline_mode<synchronous>, transform_indices = @transform_1, window_bounds = array<i64: 1, 128>}, {pipeline_mode = #tpu.pipeline_mode<synchronous>, transform_indices = @transform_2, window_bounds = array<i64: 1, 128>}, {transform_indices = @transform_3, window_bounds = array<i64: 512, 128>}]} {
    %c0 = arith.constant 0 : index
    %c0_0 = arith.constant 0 : index
    %0 = vector.load %arg1[%c0, %c0_0] : memref<512x128xf32, #tpu.memory_space<vmem>>, vector<512x128xf32>
    %c0_1 = arith.constant 0 : index
    %c0_2 = arith.constant 0 : index
    %1 = vector.load %arg2[%c0_1, %c0_2] : memref<1x128xf32, #tpu.memory_space<vmem>>, vector<1x128xf32>
    %2 = vector.broadcast %1 : vector<1x128xf32> to vector<512x128xf32>
    %3 = arith.mulf %0, %2 : vector<512x128xf32>
    %c0_3 = arith.constant 0 : index
    %c0_4 = arith.constant 0 : index
    %4 = vector.load %arg3[%c0_3, %c0_4] : memref<1x128xf32, #tpu.memory_space<vmem>>, vector<1x128xf32>
    %5 = vector.broadcast %4 : vector<1x128xf32> to vector<512x128xf32>
    %6 = arith.addf %3, %5 : vector<512x128xf32>
    %c0_5 = arith.constant 0 : index
    %c0_6 = arith.constant 0 : index
    %7 = vector.load %arg4[%c0_5, %c0_6] : memref<512x128xf32, #tpu.memory_space<vmem>>, vector<512x128xf32>
    tpu.vector_store %arg4[%c0_5, %c0_6], %6 {strides = array<i32>} : memref<512x128xf32, #tpu.memory_space<vmem>>, vector<512x128xf32>,
    return
  }
  func.func @transform_0(%arg0: i32) -> (i32, i32) {
    %c0_i32 = arith.constant 0 : i32
    %c0_i32_0 = arith.constant 0 : i32
    return %arg0, %c0_i32 : i32, i32
  }
  func.func @transform_1(%arg0: i32) -> (i32, i32) {
    %c0_i32 = arith.constant 0 : i32
    %c0_i32_0 = arith.constant 0 : i32
    %c0_i32_1 = arith.constant 0 : i32
    return %c0_i32, %c0_i32_0 : i32, i32
  }
  func.func @transform_2(%arg0: i32) -> (i32, i32) {
    %c0_i32 = arith.constant 0 : i32
    %c0_i32_0 = arith.constant 0 : i32
    %c0_i32_1 = arith.constant 0 : i32
    return %c0_i32, %c0_i32_0 : i32, i32
  }
  func.func @transform_3(%arg0: i32) -> (i32, i32) {
    %c0_i32 = arith.constant 0 : i32
    %c0_i32_0 = arith.constant 0 : i32
    return %arg0, %c0_i32 : i32, i32
  }
}

module attributes {stable_mosaic.version = 11 : i64} {
  func.func @_conv_relu_stats_kernel(%arg0: i32, %arg1: memref<512x128xbf16, #tpu.memory_space<vmem>>, %arg2: memref<128x128xbf16, #tpu.memory_space<vmem>>, %arg3: memref<1x128xf32, #tpu.memory_space<vmem>>, %arg4: memref<512x128xf32, #tpu.memory_space<vmem>>, %arg5: memref<1x8x128xf32, #tpu.memory_space<vmem>>) attributes {dimension_semantics = [#tpu.dimension_semantics<parallel>], iteration_bounds = array<i64: 1>, scalar_prefetch = 0 : i64, scratch_operands = 0 : i64, tpu.core_type = #tpu.core_type<tc>, window_params = [{transform_indices = @transform_0, window_bounds = array<i64: 512, 128>}, {pipeline_mode = #tpu.pipeline_mode<synchronous>, transform_indices = @transform_1, window_bounds = array<i64: 128, 128>}, {pipeline_mode = #tpu.pipeline_mode<synchronous>, transform_indices = @transform_2, window_bounds = array<i64: 1, 128>}, {transform_indices = @transform_3, window_bounds = array<i64: 512, 128>}, {transform_indices = @transform_4, window_bounds = array<i64: 1, 8, 128>}]} {
    %c0 = arith.constant 0 : index
    %c0_0 = arith.constant 0 : index
    %0 = vector.load %arg1[%c0, %c0_0] : memref<512x128xbf16, #tpu.memory_space<vmem>>, vector<512x128xbf16>
    %c0_1 = arith.constant 0 : index
    %c0_2 = arith.constant 0 : index
    %1 = vector.load %arg2[%c0_1, %c0_2] : memref<128x128xbf16, #tpu.memory_space<vmem>>, vector<128x128xbf16>
    %cst = arith.constant dense<0.000000e+00> : vector<512x128xf32>
    %2 = tpu.matmul %0, %1, %cst {dimension_numbers = #tpu.dot_dimension_numbers<[1], [0], [0], [1], [0, 0, 1, 1], [], []>} : vector<512x128xbf16>, vector<128x128xbf16>, vector<512x128xf32> -> vector<512x128xf32>
    %c0_3 = arith.constant 0 : index
    %c0_4 = arith.constant 0 : index
    %3 = vector.load %arg3[%c0_3, %c0_4] : memref<1x128xf32, #tpu.memory_space<vmem>>, vector<1x128xf32>
    %4 = vector.broadcast %3 : vector<1x128xf32> to vector<512x128xf32>
    %5 = arith.addf %2, %4 : vector<512x128xf32>
    %cst_5 = arith.constant 0.000000e+00 : f32
    %6 = vector.broadcast %cst_5 : f32 to vector<512x128xf32>
    %7 = arith.maximumf %5, %6 : vector<512x128xf32>
    %c0_6 = arith.constant 0 : index
    %c0_7 = arith.constant 0 : index
    %8 = vector.load %arg4[%c0_6, %c0_7] : memref<512x128xf32, #tpu.memory_space<vmem>>, vector<512x128xf32>
    tpu.vector_store %arg4[%c0_6, %c0_7], %7 {strides = array<i32>} : memref<512x128xf32, #tpu.memory_space<vmem>>, vector<512x128xf32>,
    %cst_8 = arith.constant dense<0.000000e+00> : vector<128xf32>
    %9 = vector.multi_reduction <add>, %7, %cst_8 [0] : vector<512x128xf32> to vector<128xf32>
    %10 = vector.shape_cast %9 : vector<128xf32> to vector<1x128xf32>
    %11 = arith.mulf %7, %7 : vector<512x128xf32>
    %cst_9 = arith.constant dense<0.000000e+00> : vector<128xf32>
    %12 = vector.multi_reduction <add>, %11, %cst_9 [0] : vector<512x128xf32> to vector<128xf32>
    %13 = vector.shape_cast %12 : vector<128xf32> to vector<1x128xf32>
    %cst_10 = arith.constant 0.000000e+00 : f32
    %14 = vector.broadcast %cst_10 : f32 to vector<6x128xf32>
    %15 = tpu.concatenate %10, %13, %14 in 0 : vector<1x128xf32>, vector<1x128xf32>, vector<6x128xf32> -> vector<8x128xf32>
    %c0_11 = arith.constant 0 : index
    %c0_12 = arith.constant 0 : index
    %c0_13 = arith.constant 0 : index
    %16 = vector.load %arg5[%c0_11, %c0_12, %c0_13] : memref<1x8x128xf32, #tpu.memory_space<vmem>>, vector<1x8x128xf32>
    %17 = vector.shape_cast %16 : vector<1x8x128xf32> to vector<8x128xf32>
    %18 = vector.shape_cast %15 : vector<8x128xf32> to vector<1x8x128xf32>
    tpu.vector_store %arg5[%c0_11, %c0_12, %c0_13], %18 {strides = array<i32>} : memref<1x8x128xf32, #tpu.memory_space<vmem>>, vector<1x8x128xf32>,
    return
  }
  func.func @transform_0(%arg0: i32) -> (i32, i32) {
    %c0_i32 = arith.constant 0 : i32
    %c0_i32_0 = arith.constant 0 : i32
    return %arg0, %c0_i32 : i32, i32
  }
  func.func @transform_1(%arg0: i32) -> (i32, i32) {
    %c0_i32 = arith.constant 0 : i32
    %c0_i32_0 = arith.constant 0 : i32
    %c0_i32_1 = arith.constant 0 : i32
    return %c0_i32, %c0_i32_0 : i32, i32
  }
  func.func @transform_2(%arg0: i32) -> (i32, i32) {
    %c0_i32 = arith.constant 0 : i32
    %c0_i32_0 = arith.constant 0 : i32
    %c0_i32_1 = arith.constant 0 : i32
    return %c0_i32, %c0_i32_0 : i32, i32
  }
  func.func @transform_3(%arg0: i32) -> (i32, i32) {
    %c0_i32 = arith.constant 0 : i32
    %c0_i32_0 = arith.constant 0 : i32
    return %arg0, %c0_i32 : i32, i32
  }
  func.func @transform_4(%arg0: i32) -> (i32, i32, i32) {
    %c0_i32 = arith.constant 0 : i32
    %c0_i32_0 = arith.constant 0 : i32
    %c0_i32_1 = arith.constant 0 : i32
    return %arg0, %c0_i32, %c0_i32_0 : i32, i32, i32
  }
}

module attributes {stable_mosaic.version = 11 : i64} {
  func.func @_scale_shift_kernel(%arg0: i32, %arg1: memref<512x128xf32, #tpu.memory_space<vmem>>, %arg2: memref<1x128xf32, #tpu.memory_space<vmem>>, %arg3: memref<1x128xf32, #tpu.memory_space<vmem>>, %arg4: memref<512x128xf32, #tpu.memory_space<vmem>>) attributes {dimension_semantics = [#tpu.dimension_semantics<parallel>], iteration_bounds = array<i64: 1>, scalar_prefetch = 0 : i64, scratch_operands = 0 : i64, tpu.core_type = #tpu.core_type<tc>, window_params = [{transform_indices = @transform_0, window_bounds = array<i64: 512, 128>}, {pipeline_mode = #tpu.pipeline_mode<synchronous>, transform_indices = @transform_1, window_bounds = array<i64: 1, 128>}, {pipeline_mode = #tpu.pipeline_mode<synchronous>, transform_indices = @transform_2, window_bounds = array<i64: 1, 128>}, {transform_indices = @transform_3, window_bounds = array<i64: 512, 128>}]} {
    %c0 = arith.constant 0 : index
    %c0_0 = arith.constant 0 : index
    %0 = vector.load %arg1[%c0, %c0_0] : memref<512x128xf32, #tpu.memory_space<vmem>>, vector<512x128xf32>
    %c0_1 = arith.constant 0 : index
    %c0_2 = arith.constant 0 : index
    %1 = vector.load %arg2[%c0_1, %c0_2] : memref<1x128xf32, #tpu.memory_space<vmem>>, vector<1x128xf32>
    %2 = vector.broadcast %1 : vector<1x128xf32> to vector<512x128xf32>
    %3 = arith.mulf %0, %2 : vector<512x128xf32>
    %c0_3 = arith.constant 0 : index
    %c0_4 = arith.constant 0 : index
    %4 = vector.load %arg3[%c0_3, %c0_4] : memref<1x128xf32, #tpu.memory_space<vmem>>, vector<1x128xf32>
    %5 = vector.broadcast %4 : vector<1x128xf32> to vector<512x128xf32>
    %6 = arith.addf %3, %5 : vector<512x128xf32>
    %c0_5 = arith.constant 0 : index
    %c0_6 = arith.constant 0 : index
    %7 = vector.load %arg4[%c0_5, %c0_6] : memref<512x128xf32, #tpu.memory_space<vmem>>, vector<512x128xf32>
    tpu.vector_store %arg4[%c0_5, %c0_6], %6 {strides = array<i32>} : memref<512x128xf32, #tpu.memory_space<vmem>>, vector<512x128xf32>,
    return
  }
  func.func @transform_0(%arg0: i32) -> (i32, i32) {
    %c0_i32 = arith.constant 0 : i32
    %c0_i32_0 = arith.constant 0 : i32
    return %arg0, %c0_i32 : i32, i32
  }
  func.func @transform_1(%arg0: i32) -> (i32, i32) {
    %c0_i32 = arith.constant 0 : i32
    %c0_i32_0 = arith.constant 0 : i32
    %c0_i32_1 = arith.constant 0 : i32
    return %c0_i32, %c0_i32_0 : i32, i32
  }
  func.func @transform_2(%arg0: i32) -> (i32, i32) {
    %c0_i32 = arith.constant 0 : i32
    %c0_i32_0 = arith.constant 0 : i32
    %c0_i32_1 = arith.constant 0 : i32
    return %c0_i32, %c0_i32_0 : i32, i32
  }
  func.func @transform_3(%arg0: i32) -> (i32, i32) {
    %c0_i32 = arith.constant 0 : i32
    %c0_i32_0 = arith.constant 0 : i32
    return %arg0, %c0_i32 : i32, i32
  }
}

</mosaic_0001>

<bundles_post_ra>
// kernel: forward.5
= control target key start
LH: loop header
LB: loop body
LE: loop exit
PB: predicated region body
PF: predicated region fallthrough
CT: control target
= control target key end

     0   :  { %s549_s12 = smov 0   ;;  %s836_s0 = inlined_call_operand.vmem [shape: f32[2048,128], index: 0, kind: input, shape index: {}]   ;;  %s837_s1 = inlined_call_operand.vmem [shape: f32[1,128], index: 1, kind: input, shape index: {}]   ;;  %s838_s2 = inlined_call_operand.vmem [shape: f32[1,128], index: 2, kind: input, shape index: {}]   ;;  %s839_s3 = inlined_call_operand.vmem [shape: f32[2048,128], index: 3, kind: output, shape index: {}]  }
   0x1 LB: > { %s500_s13 = sadd.s32 4294967295, %s527_s12   ;;  %p504_p0 = scmp.ge.s32.totalorder %s527_s12, 1  ;;  %s527_s12 = sphi %s549_s12, %s13_s12  }
   0x2   : > { %p138_p1 = scmp.lt.s32.totalorder %s527_s12, 5 }
   0x4   : > { %p139_p2 = pnand %p504_p0, %p138_p1 }
   0x5   : > { %s505_s14 = sshll.u32 (!%p139_p2), %s500_s13, 6 }
   0x6   : > { %142 = sbr.rel (%p139_p2) target bundleno = 57 (0x39), region = 32  ;;  %p163_p3 = scmp.lt.s32.totalorder (!%p139_p2), %s505_s14, 255 }
   0xb   : > { %s841_s14 = smov (!%p163_p3, %s505_s14), 255  ;;  %v560_v0 = vld [vmem:[%s837_s1] ss:$0 sm:$0xff] }
   0xc   : > { %s506_s15 = sshll.u32 %s841_s14, 3  ;;  %v570_v1 = vld [vmem:[%s838_s2] ss:$0 sm:$0xff] }
   0xd   : > { %s565_s20 = scalar_lea.vmem %s836_s0, %s506_s15  ;;  %s584_s25 = scalar_lea.vmem %s839_s3, %s506_s15 }
   0xe   : > { %v174_v2 = vld [vmem:[%s565_s20] sm:$0xff]  ;;  %v175_v3 = vld [vmem:[%s565_s20 + $0x8] sm:$0xff]  ;;  %v176_v4 = vld [vmem:[%s565_s20 + $0x10] sm:$0xff] }
   0xf   : > { %v245_v5 = vmul.f32 %v560_v0, %v174_v2  ;;  %v246_v6 = vmul.f32 %v560_v0, %v175_v3  ;;  %v247_v7 = vmul.f32 %v560_v0, %v176_v4  ;;  %v177_v8 = vld [vmem:[%s565_s20 + $0x18] sm:$0xff]  ;;  %v178_v9 = vld [vmem:[%s565_s20 + $0x20] sm:$0xff]  ;;  %v179_v10 = vld [vmem:[%s565_s20 + $0x28] sm:$0xff] }
  0x10   : > { %v248_v11 = vmul.f32 %v560_v0, %v177_v8  ;;  %v249_v12 = vmul.f32 %v560_v0, %v178_v9  ;;  %v250_v13 = vmul.f32 %v560_v0, %v179_v10  ;;  %v180_v14 = vld [vmem:[%s565_s20 + $0x30] sm:$0xff]  ;;  %v181_v15 = vld [vmem:[%s565_s20 + $0x38] sm:$0xff]  ;;  %v182_v16 = vld [vmem:[%s565_s20 + $0x40] sm:$0xff] }
  0x11   : > { %v316_v17 = vadd.f32 %v570_v1, %v245_v5  ;;  %v317_v18 = vadd.f32 %v570_v1, %v246_v6  ;;  %v318_v19 = vadd.f32 %v570_v1, %v247_v7  ;;  %v251_v20 = vmul.f32 %v560_v0, %v180_v14  ;;  %v183_v21 = vld [vmem:[%s565_s20 + $0x48] sm:$0xff]  ;;  %v184_v22 = vld [vmem:[%s565_s20 + $0x50] sm:$0xff]  ;;  %v185_v23 = vld [vmem:[%s565_s20 + $0x58] sm:$0xff] }
  0x12   : > { %v319_v24 = vadd.f32 %v570_v1, %v248_v11  ;;  %v320_v25 = vadd.f32 %v570_v1, %v249_v12  ;;  %v321_v26 = vadd.f32 %v570_v1, %v250_v13  ;;  %v252_v27 = vmul.f32 %v560_v0, %v181_v15  ;;  %v186_v28 = vld [vmem:[%s565_s20 + $0x60] sm:$0xff]  ;;  %v187_v29 = vld [vmem:[%s565_s20 + $0x68] sm:$0xff]  ;;  %v188_v30 = vld [vmem:[%s565_s20 + $0x70] sm:$0xff] }
  0x13   : > { %380 = vst [vmem:[%s584_s25] sm:$0xff] %v316_v17  ;;  %381 = vst [vmem:[%s584_s25 + $0x8] sm:$0xff] %v317_v18  ;;  %v322_v31 = vadd.f32 %v570_v1, %v251_v20  ;;  %v253_v32 = vmul.f32 %v560_v0, %v182_v16  ;;  %v254_v33 = vmul.f32 %v560_v0, %v183_v21  ;;  %v189_v35 = vld [vmem:[%s565_s20 + $0x78] sm:$0xff]  ;;  %v190_v40 = vld [vmem:[%s565_s20 + $0x80] sm:$0xff] }
  0x14   : > { %382 = vst [vmem:[%s584_s25 + $0x10] sm:$0xff] %v318_v19  ;;  %v255_v34 = vmul.f32 %v560_v0, %v184_v22  ;;  %383 = vst [vmem:[%s584_s25 + $0x18] sm:$0xff] %v319_v24  ;;  %v323_v36 = vadd.f32 %v570_v1, %v252_v27  ;;  %v256_v37 = vmul.f32 %v560_v0, %v185_v23  ;;  %v191_v41 = vld [vmem:[%s565_s20 + $0x88] sm:$0xff]  ;;  %v192_v42 = vld [vmem:[%s565_s20 + $0x90] sm:$0xff] }
  0x15   : > { %384 = vst [vmem:[%s584_s25 + $0x20] sm:$0xff] %v320_v25  ;;  %385 = vst [vmem:[%s584_s25 + $0x28] sm:$0xff] %v321_v26  ;;  %v257_v38 = vmul.f32 %v560_v0, %v186_v28  ;;  %v258_v39 = vmul.f32 %v560_v0, %v187_v29  ;;  %v324_v43 = vadd.f32 %v570_v1, %v253_v32  ;;  %v193_v47 = vld [vmem:[%s565_s20 + $0x98] sm:$0xff]  ;;  %v194_v48 = vld [vmem:[%s565_s20 + $0xa0] sm:$0xff] }
  0x16   : > { %386 = vst [vmem:[%s584_s25 + $0x30] sm:$0xff] %v322_v31  ;;  %v325_v44 = vadd.f32 %v570_v1, %v254_v33  ;;  %v326_v45 = vadd.f32 %v570_v1, %v255_v34  ;;  %v259_v46 = vmul.f32 %v560_v0, %v188_v30  ;;  %v195_v49 = vld [vmem:[%s565_s20 + $0xa8] sm:$0xff]  ;;  %387 = vst [vmem:[%s584_s25 + $0x38] sm:$0xff] %v323_v36  ;;  %v196_v54 = vld [vmem:[%s565_s20 + $0xb0] sm:$0xff] }
  0x17   : > { %v327_v50 = vadd.f32 %v570_v1, %v256_v37  ;;  %v328_v51 = vadd.f32 %v570_v1, %v257_v38  ;;  %v329_v52 = vadd.f32 %v570_v1, %v258_v39  ;;  %v260_v53 = vmul.f32 %v560_v0, %v189_v35  ;;  %388 = vst [vmem:[%s584_s25 + $0x40] sm:$0xff] %v324_v43  ;;  %v197_v59 = vld [vmem:[%s565_s20 + $0xb8] sm:$0xff]  ;;  %v198_v2 = vld [vmem:[%s565_s20 + $0xc0] sm:$0xff]  ;;  %v199_v3 = vld [vmem:[%s565_s20 + $0xc8] sm:$0xff] }
  0x18   : > { %389 = vst [vmem:[%s584_s25 + $0x48] sm:$0xff] %v325_v44  ;;  %390 = vst [vmem:[%s584_s25 + $0x50] sm:$0xff] %v326_v45  ;;  %v330_v55 = vadd.f32 %v570_v1, %v259_v46  ;;  %v261_v56 = vmul.f32 %v560_v0, %v190_v40  ;;  %v262_v57 = vmul.f32 %v560_v0, %v191_v41  ;;  %v200_v4 = vld [vmem:[%s565_s20 + $0xd0] sm:$0xff]  ;;  %v201_v9 = vld [vmem:[%s565_s20 + $0xd8] sm:$0xff] }
  0x19   : > { %v263_v58 = vmul.f32 %v560_v0, %v192_v42  ;;  %391 = vst [vmem:[%s584_s25 + $0x58] sm:$0xff] %v327_v50  ;;  %392 = vst [vmem:[%s584_s25 + $0x60] sm:$0xff] %v328_v51  ;;  %v331_v60 = vadd.f32 %v570_v1, %v260_v53  ;;  %v264_v61 = vmul.f32 %v560_v0, %v193_v47  ;;  %v202_v10 = vld [vmem:[%s565_s20 + $0xe0] sm:$0xff]  ;;  %v203_v11 = vld [vmem:[%s565_s20 + $0xe8] sm:$0xff] }
  0x1a   : > { %393 = vst [vmem:[%s584_s25 + $0x68] sm:$0xff] %v329_v52  ;;  %v265_v62 = vmul.f32 %v560_v0, %v194_v48  ;;  %v266_v63 = vmul.f32 %v560_v0, %v195_v49  ;;  %394 = vst [vmem:[%s584_s25 + $0x70] sm:$0xff] %v330_v55  ;;  %v332_v5 = vadd.f32 %v570_v1, %v261_v56  ;;  %v204_v16 = vld [vmem:[%s565_s20 + $0xf0] sm:$0xff]  ;;  %v205_v21 = vld [vmem:[%s565_s20 + $0xf8] sm:$0xff] }
  0x1b   : > { %v333_v6 = vadd.f32 %v570_v1, %v262_v57  ;;  %v334_v7 = vadd.f32 %v570_v1, %v263_v58  ;;  %v267_v8 = vmul.f32 %v560_v0, %v196_v54  ;;  %395 = vst [vmem:[%s584_s25 + $0x78] sm:$0xff] %v331_v60  ;;  %v335_v12 = vadd.f32 %v570_v1, %v264_v61  ;;  %v206_v26 = vld [vmem:[%s565_s20 + $0x100] sm:$0xff]  ;;  %v207_v27 = vld [vmem:[%s565_s20 + $0x108] sm:$0xff]  ;;  %v208_v28 = vld [vmem:[%s565_s20 + $0x110] sm:$0xff] }
  0x1c   : > { %v336_v13 = vadd.f32 %v570_v1, %v265_v62  ;;  %v337_v14 = vadd.f32 %v570_v1, %v266_v63  ;;  %v268_v15 = vmul.f32 %v560_v0, %v197_v59  ;;  %396 = vst [vmem:[%s584_s25 + $0x80] sm:$0xff] %v332_v5  ;;  %v269_v18 = vmul.f32 %v560_v0, %v198_v2  ;;  %v209_v33 = vld [vmem:[%s565_s20 + $0x118] sm:$0xff]  ;;  %v210_v34 = vld [vmem:[%s565_s20 + $0x120] sm:$0xff]  ;;  %v211_v35 = vld [vmem:[%s565_s20 + $0x128] sm:$0xff] }
  0x1d   : > { %397 = vst [vmem:[%s584_s25 + $0x88] sm:$0xff] %v333_v6  ;;  %398 = vst [vmem:[%s584_s25 + $0x90] sm:$0xff] %v334_v7  ;;  %v338_v17 = vadd.f32 %v570_v1, %v267_v8  ;;  %v270_v19 = vmul.f32 %v560_v0, %v199_v3  ;;  %v271_v20 = vmul.f32 %v560_v0, %v200_v4  ;;  %v212_v40 = vld [vmem:[%s565_s20 + $0x130] sm:$0xff]  ;;  %v213_v45 = vld [vmem:[%s565_s20 + $0x138] sm:$0xff] }
  0x1e   : > { %399 = vst [vmem:[%s584_s25 + $0x98] sm:$0xff] %v335_v12  ;;  %400 = vst [vmem:[%s584_s25 + $0xa0] sm:$0xff] %v336_v13  ;;  %v339_v22 = vadd.f32 %v570_v1, %v268_v15  ;;  %v272_v23 = vmul.f32 %v560_v0, %v201_v9  ;;  %v273_v24 = vmul.f32 %v560_v0, %v202_v10  ;;  %v214_v50 = vld [vmem:[%s565_s20 + $0x140] sm:$0xff]  ;;  %v215_v51 = vld [vmem:[%s565_s20 + $0x148] sm:$0xff] }
  0x1f   : > { %401 = vst [vmem:[%s584_s25 + $0xa8] sm:$0xff] %v337_v14  ;;  %v274_v25 = vmul.f32 %v560_v0, %v203_v11  ;;  %402 = vst [vmem:[%s584_s25 + $0xb0] sm:$0xff] %v338_v17  ;;  %v340_v29 = vadd.f32 %v570_v1, %v269_v18  ;;  %v341_v30 = vadd.f32 %v570_v1, %v270_v19  ;;  %v216_v52 = vld [vmem:[%s565_s20 + $0x150] sm:$0xff]  ;;  %v217_v57 = vld [vmem:[%s565_s20 + $0x158] sm:$0xff] }
  0x20   : > { %v342_v31 = vadd.f32 %v570_v1, %v271_v20  ;;  %v275_v32 = vmul.f32 %v560_v0, %v204_v16  ;;  %403 = vst [vmem:[%s584_s25 + $0xb8] sm:$0xff] %v339_v22  ;;  %v343_v36 = vadd.f32 %v570_v1, %v272_v23  ;;  %v344_v37 = vadd.f32 %v570_v1, %v273_v24  ;;  %v218_v58 = vld [vmem:[%s565_s20 + $0x160] sm:$0xff]  ;;  %v219_v59 = vld [vmem:[%s565_s20 + $0x168] sm:$0xff]  ;;  %v220_v2 = vld [vmem:[%s565_s20 + $0x170] sm:$0xff] }
  0x21   : > { %v345_v38 = vadd.f32 %v570_v1, %v274_v25  ;;  %v276_v39 = vmul.f32 %v560_v0, %v205_v21  ;;  %404 = vst [vmem:[%s584_s25 + $0xc0] sm:$0xff] %v340_v29  ;;  %405 = vst [vmem:[%s584_s25 + $0xc8] sm:$0xff] %v341_v30  ;;  %v277_v42 = vmul.f32 %v560_v0, %v206_v26  ;;  %v221_v7 = vld [vmem:[%s565_s20 + $0x178] sm:$0xff]  ;;  %v222_v12 = vld [vmem:[%s565_s20 + $0x180] sm:$0xff] }
  0x22   : > { %406 = vst [vmem:[%s584_s25 + $0xd0] sm:$0xff] %v342_v31  ;;  %v346_v41 = vadd.f32 %v570_v1, %v275_v32  ;;  %v278_v43 = vmul.f32 %v560_v0, %v207_v27  ;;  %v279_v44 = vmul.f32 %v560_v0, %v208_v28  ;;  %407 = vst [vmem:[%s584_s25 + $0xd8] sm:$0xff] %v343_v36  ;;  %v223_v13 = vld [vmem:[%s565_s20 + $0x188] sm:$0xff]  ;;  %v224_v14 = vld [vmem:[%s565_s20 + $0x190] sm:$0xff] }
  0x23   : > { %408 = vst [vmem:[%s584_s25 + $0xe0] sm:$0xff] %v344_v37  ;;  %409 = vst [vmem:[%s584_s25 + $0xe8] sm:$0xff] %v345_v38  ;;  %v347_v46 = vadd.f32 %v570_v1, %v276_v39  ;;  %v280_v47 = vmul.f32 %v560_v0, %v209_v33  ;;  %v281_v48 = vmul.f32 %v560_v0, %v210_v34  ;;  %v225_v19 = vld [vmem:[%s565_s20 + $0x198] sm:$0xff]  ;;  %v226_v20 = vld [vmem:[%s565_s20 + $0x1a0] sm:$0xff] }
  0x24   : > { %v282_v49 = vmul.f32 %v560_v0, %v211_v35  ;;  %410 = vst [vmem:[%s584_s25 + $0xf0] sm:$0xff] %v346_v41  ;;  %v348_v53 = vadd.f32 %v570_v1, %v277_v42  ;;  %v349_v54 = vadd.f32 %v570_v1, %v278_v43  ;;  %v350_v55 = vadd.f32 %v570_v1, %v279_v44  ;;  %v227_v21 = vld [vmem:[%s565_s20 + $0x1a8] sm:$0xff]  ;;  %v228_v26 = vld [vmem:[%s565_s20 + $0x1b0] sm:$0xff]  ;;  %v229_v31 = vld [vmem:[%s565_s20 + $0x1b8] sm:$0xff] }
  0x25   : > { %v283_v56 = vmul.f32 %v560_v0, %v212_v40  ;;  %411 = vst [vmem:[%s584_s25 + $0xf8] sm:$0xff] %v347_v46  ;;  %v351_v60 = vadd.f32 %v570_v1, %v280_v47  ;;  %v352_v61 = vadd.f32 %v570_v1, %v281_v48  ;;  %v284_v63 = vmul.f32 %v560_v0, %v213_v45  ;;  %v230_v36 = vld [vmem:[%s565_s20 + $0x1c0] sm:$0xff]  ;;  %v231_v37 = vld [vmem:[%s565_s20 + $0x1c8] sm:$0xff]  ;;  %v232_v38 = vld [vmem:[%s565_s20 + $0x1d0] sm:$0xff] }
  0x26   : > { %v353_v62 = vadd.f32 %v570_v1, %v282_v49  ;;  %412 = vst [vmem:[%s584_s25 + $0x100] sm:$0xff] %v348_v53  ;;  %413 = vst [vmem:[%s584_s25 + $0x108] sm:$0xff] %v349_v54  ;;  %v285_v4 = vmul.f32 %v560_v0, %v214_v50  ;;  %v286_v5 = vmul.f32 %v560_v0, %v215_v51  ;;  %v233_v43 = vld [vmem:[%s565_s20 + $0x1d8] sm:$0xff]  ;;  %v234_v44 = vld [vmem:[%s565_s20 + $0x1e0] sm:$0xff] }
  0x27   : > { %414 = vst [vmem:[%s584_s25 + $0x110] sm:$0xff] %v350_v55  ;;  %v354_v3 = vadd.f32 %v570_v1, %v283_v56  ;;  %v287_v6 = vmul.f32 %v560_v0, %v216_v52  ;;  %415 = vst [vmem:[%s584_s25 + $0x118] sm:$0xff] %v351_v60  ;;  %v355_v8 = vadd.f32 %v570_v1, %v284_v63  ;;  %v235_v45 = vld [vmem:[%s565_s20 + $0x1e8] sm:$0xff]  ;;  %v236_v50 = vld [vmem:[%s565_s20 + $0x1f0] sm:$0xff] }
  0x28   : > { %416 = vst [vmem:[%s584_s25 + $0x120] sm:$0xff] %v352_v61  ;;  %417 = vst [vmem:[%s584_s25 + $0x128] sm:$0xff] %v353_v62  ;;  %v288_v9 = vmul.f32 %v560_v0, %v217_v57  ;;  %v289_v10 = vmul.f32 %v560_v0, %v218_v58  ;;  %v290_v11 = vmul.f32 %v560_v0, %v219_v59  ;;  %v237_v55 = vld [vmem:[%s565_s20 + $0x1f8] sm:$0xff] }
  0x29   : > { %418 = vst [vmem:[%s584_s25 + $0x130] sm:$0xff] %v354_v3  ;;  %v356_v15 = vadd.f32 %v570_v1, %v285_v4  ;;  %v357_v16 = vadd.f32 %v570_v1, %v286_v5  ;;  %v358_v17 = vadd.f32 %v570_v1, %v287_v6  ;;  %v291_v18 = vmul.f32 %v560_v0, %v220_v2 }
  0x2a   : > { %419 = vst [vmem:[%s584_s25 + $0x138] sm:$0xff] %v355_v8  ;;  %v359_v22 = vadd.f32 %v570_v1, %v288_v9  ;;  %v360_v23 = vadd.f32 %v570_v1, %v289_v10  ;;  %v361_v24 = vadd.f32 %v570_v1, %v290_v11  ;;  %v292_v25 = vmul.f32 %v560_v0, %v221_v7 }
  0x2b   : > { %420 = vst [vmem:[%s584_s25 + $0x140] sm:$0xff] %v356_v15  ;;  %421 = vst [vmem:[%s584_s25 + $0x148] sm:$0xff] %v357_v16  ;;  %v362_v27 = vadd.f32 %v570_v1, %v291_v18  ;;  %v293_v28 = vmul.f32 %v560_v0, %v222_v12  ;;  %v294_v29 = vmul.f32 %v560_v0, %v223_v13 }
  0x2c   : > { %422 = vst [vmem:[%s584_s25 + $0x150] sm:$0xff] %v358_v17  ;;  %v295_v30 = vmul.f32 %v560_v0, %v224_v14  ;;  %423 = vst [vmem:[%s584_s25 + $0x158] sm:$0xff] %v359_v22  ;;  %v363_v32 = vadd.f32 %v570_v1, %v292_v25  ;;  %v296_v33 = vmul.f32 %v560_v0, %v225_v19 }
  0x2d   : > { %424 = vst [vmem:[%s584_s25 + $0x160] sm:$0xff] %v360_v23  ;;  %425 = vst [vmem:[%s584_s25 + $0x168] sm:$0xff] %v361_v24  ;;  %v297_v34 = vmul.f32 %v560_v0, %v226_v20  ;;  %v298_v35 = vmul.f32 %v560_v0, %v227_v21  ;;  %v364_v39 = vadd.f32 %v570_v1, %v293_v28 }
  0x2e   : > { %426 = vst [vmem:[%s584_s25 + $0x170] sm:$0xff] %v362_v27  ;;  %v365_v40 = vadd.f32 %v570_v1, %v294_v29  ;;  %v366_v41 = vadd.f32 %v570_v1, %v295_v30  ;;  %v299_v42 = vmul.f32 %v560_v0, %v228_v26  ;;  %427 = vst [vmem:[%s584_s25 + $0x178] sm:$0xff] %v363_v32 }
  0x2f   : > { %v367_v46 = vadd.f32 %v570_v1, %v296_v33  ;;  %v368_v47 = vadd.f32 %v570_v1, %v297_v34  ;;  %v369_v48 = vadd.f32 %v570_v1, %v298_v35  ;;  %v300_v49 = vmul.f32 %v560_v0, %v229_v31  ;;  %428 = vst [vmem:[%s584_s25 + $0x180] sm:$0xff] %v364_v39 }
  0x30   : > { %429 = vst [vmem:[%s584_s25 + $0x188] sm:$0xff] %v365_v40  ;;  %430 = vst [vmem:[%s584_s25 + $0x190] sm:$0xff] %v366_v41  ;;  %v370_v51 = vadd.f32 %v570_v1, %v299_v42  ;;  %v301_v52 = vmul.f32 %v560_v0, %v230_v36  ;;  %v302_v53 = vmul.f32 %v560_v0, %v231_v37 }
  0x31   : > { %v303_v54 = vmul.f32 %v560_v0, %v232_v38  ;;  %431 = vst [vmem:[%s584_s25 + $0x198] sm:$0xff] %v367_v46  ;;  %432 = vst [vmem:[%s584_s25 + $0x1a0] sm:$0xff] %v368_v47  ;;  %v371_v56 = vadd.f32 %v570_v1, %v300_v49  ;;  %v304_v57 = vmul.f32 %v560_v0, %v233_v43 }
  0x32   : > { %433 = vst [vmem:[%s584_s25 + $0x1a8] sm:$0xff] %v369_v48  ;;  %v305_v58 = vmul.f32 %v560_v0, %v234_v44  ;;  %v306_v59 = vmul.f32 %v560_v0, %v235_v45  ;;  %434 = vst [vmem:[%s584_s25 + $0x1b0] sm:$0xff] %v370_v51  ;;  %v372_v60 = vadd.f32 %v570_v1, %v301_v52 }
  0x33   : > { %v373_v61 = vadd.f32 %v570_v1, %v302_v53  ;;  %v374_v62 = vadd.f32 %v570_v1, %v303_v54  ;;  %v307_v63 = vmul.f32 %v560_v0, %v236_v50  ;;  %435 = vst [vmem:[%s584_s25 + $0x1b8] sm:$0xff] %v371_v56  ;;  %v375_v2 = vadd.f32 %v570_v1, %v304_v57 }
  0x34   : > { %v376_v3 = vadd.f32 %v570_v1, %v305_v58  ;;  %v377_v4 = vadd.f32 %v570_v1, %v306_v59  ;;  %v308_v5 = vmul.f32 %v560_v0, %v237_v55  ;;  %436 = vst [vmem:[%s584_s25 + $0x1c0] sm:$0xff] %v372_v60 }
  0x35   : > { %437 = vst [vmem:[%s584_s25 + $0x1c8] sm:$0xff] %v373_v61  ;;  %438 = vst [vmem:[%s584_s25 + $0x1d0] sm:$0xff] %v374_v62  ;;  %v378_v6 = vadd.f32 %v570_v1, %v307_v63 }
  0x36   : > { %439 = vst [vmem:[%s584_s25 + $0x1d8] sm:$0xff] %v375_v2  ;;  %440 = vst [vmem:[%s584_s25 + $0x1e0] sm:$0xff] %v376_v3  ;;  %v379_v7 = vadd.f32 %v570_v1, %v308_v5 }
  0x37   : > { %441 = vst [vmem:[%s584_s25 + $0x1e8] sm:$0xff] %v377_v4  ;;  %442 = vst [vmem:[%s584_s25 + $0x1f0] sm:$0xff] %v378_v6 }
  0x38   : > { %443 = vst [vmem:[%s584_s25 + $0x1f8] sm:$0xff] %v379_v7 }
  0x39 PF: > { %s13_s12 = sadd.s32 1, %s527_s12  }
  0x3a   : > { %p10_p4 = scmp.ge.s32.totalorder %s13_s12, 6  }
  0x3c   :  { %12 = sbr.rel (!%p10_p4) target bundleno = 1 (0x1), region = 62 }

// kernel: forward.4
= control target key start
LH: loop header
LB: loop body
LE: loop exit
PB: predicated region body
PF: predicated region fallthrough
CT: control target
= control target key end

     0   :  { %s1521_s15 = smov 0   ;;  %s1935_s0 = inlined_call_operand.vmem [shape: bf16[2048,128], index: 0, kind: input, shape index: {}]   ;;  %s1936_s1 = inlined_call_operand.vmem [shape: bf16[128,128], index: 1, kind: input, shape index: {}]   ;;  %s1937_s2 = inlined_call_operand.vmem [shape: f32[1,128], index: 2, kind: input, shape index: {}]   ;;  %s1938_s3 = inlined_call_operand.vmem [shape: f32[2048,128], index: 3, kind: output, shape index: {0}]   ;;  %s1939_s4 = inlined_call_operand.vmem [shape: f32[4,8,128], index: 4, kind: output, shape index: {1}]  }
   0x1 LB: > { %s1527_s16 = sadd.s32 4294967295, %s1494_s15   ;;  %p1255_p0 = scmp.ge.s32.totalorder %s1494_s15, 1  ;;  %s1494_s15 = sphi %s1521_s15, %s15_s15  }
   0x2   : > { %p166_p1 = scmp.lt.s32.totalorder %s1494_s15, 5 }
   0x4   : > { %p167_p2 = pnand %p1255_p0, %p166_p1 }
   0x5   : > { %s1256_s19 = sshll.u32 (!%p167_p2), %s1527_s16, 6  ;;  %p208_p4 = scmp.lt.s32.totalorder (!%p167_p2), %s1527_s16, 3 }
   0x6   : > { %170 = sbr.rel (%p167_p2) target bundleno = 391 (0x187), region = 32  ;;  %p197_p3 = scmp.lt.s32.totalorder (!%p167_p2), %s1256_s19, 255 }
   0xb   : > { %v1448_v0 = vld [vmem:[%s1936_s1 + $0x38] sm:$0xff]   ;;  %v1449_v1 = vld [vmem:[%s1936_s1 + $0x30] sm:$0xff]   ;;  %s1941_s19 = smov (!%p197_p3, %s1256_s19), 255  ;;  %v1450_v2 = vld [vmem:[%s1936_s1 + $0x28] sm:$0xff]   ;;  %s1943_s16 = smov (!%p208_p4, %s1527_s16), 3  ;;  %vm1159_vm0 = vcmask 1040384  }
   0xc   : > { %1344 = vmatprep.subr.bf16.mxu0 %v1448_v0  ;;  %1424 = vmatprep.subr.bf16.mxu1 %v1448_v0  ;;  %s1257_s24 = sshll.u32 %s1941_s19, 2  ;;  %v1451_v3 = vld [vmem:[%s1936_s1 + $0x20] sm:$0xff]   ;;  %v1452_v5 = vld [vmem:[%s1936_s1 + $0x18] sm:$0xff]   ;;  %v1453_v6 = vld [vmem:[%s1936_s1 + $0x10] sm:$0xff]   ;;  %s1259_s14 = sshll.u32 %s1941_s19, 3  ;;  %vm1161_vm1 = vcmask 1041408  }
   0xd   : > { %1345 = vmatpush3.bf16.msra.mxu0 %v1448_v0  ;;  %1432 = vmatpush3.bf16.msra.mxu1 %v1448_v0  ;;  %s1547_s27 = scalar_lea.vmem %s1935_s0, %s1257_s24  ;;  %v1454_v7 = vld [vmem:[%s1936_s1 + $0x8] sm:$0xff]   ;;  %v1455_v8 = vld [vmem:[%s1936_s1] sm:$0xff]   ;;  %s1607_s20 = scalar_lea.vmem %s1938_s3, %s1259_s14 }
   0xe   : > { %1346 = vmatprep.subr.bf16.mxu0 %v1449_v1  ;;  %1425 = vmatprep.subr.bf16.mxu1 %v1449_v1  ;;  %v1456_v4 = vld [vmem:[%s1547_s27] sm:$0xff]   ;;  %v1457_v10 = vld [vmem:[%s1547_s27 + $0x8] sm:$0xff]   ;;  %v1458_v11 = vld [vmem:[%s1547_s27 + $0x10] sm:$0xff]   ;;  %s1260_s19 = sshll.u32 %s1943_s16, 3 }
   0xf   : > { %1360 = vmatprep.mubr.bf16.mxu0 %v1456_v4  ;;  %v1472_v9 = vld [vmem:[%s1547_s27 + $0x80] sm:$0xff]   ;;  %v1473_v12 = vld [vmem:[%s1547_s27 + $0x88] sm:$0xff]   ;;  %v1474_v13 = vld [vmem:[%s1547_s27 + $0x90] sm:$0xff]   ;;  %s211_s23 = scalar_lea.vmem %s1939_s4, %s1260_s19 }
  0x10   : > { %1392 = vmatprep.mubr.bf16.mxu1 %v1472_v9  ;;  %v1459_v14 = vld [vmem:[%s1547_s27 + $0x18] sm:$0xff]   ;;  %v1460_v15 = vld [vmem:[%s1547_s27 + $0x20] sm:$0xff]   ;;  %v1461_v18 = vld [vmem:[%s1547_s27 + $0x28] sm:$0xff]  }
  0x11   : > { %1347 = vmatpush3.bf16.msra.mxu0 %v1449_v1  ;;  %1433 = vmatpush3.bf16.msra.mxu1 %v1449_v1  ;;  %v1475_v16 = vld [vmem:[%s1547_s27 + $0x98] sm:$0xff]   ;;  %v1476_v17 = vld [vmem:[%s1547_s27 + $0xa0] sm:$0xff]   ;;  %v1477_v19 = vld [vmem:[%s1547_s27 + $0xa8] sm:$0xff]  }
  0x12   : > { %1348 = vmatprep.subr.bf16.mxu0 %v1450_v2  ;;  %1426 = vmatprep.subr.bf16.mxu1 %v1450_v2  ;;  %v1462_v20 = vld [vmem:[%s1547_s27 + $0x30] sm:$0xff]   ;;  %v1463_v22 = vld [vmem:[%s1547_s27 + $0x38] sm:$0xff]   ;;  %v1464_v24 = vld [vmem:[%s1547_s27 + $0x40] sm:$0xff]  }
  0x13   : > { %v1478_v21 = vld [vmem:[%s1547_s27 + $0xb0] sm:$0xff]   ;;  %v1479_v23 = vld [vmem:[%s1547_s27 + $0xb8] sm:$0xff]   ;;  %v1480_v25 = vld [vmem:[%s1547_s27 + $0xc0] sm:$0xff]  }
  0x14   : > { %v1465_v26 = vld [vmem:[%s1547_s27 + $0x48] sm:$0xff]   ;;  %v1466_v28 = vld [vmem:[%s1547_s27 + $0x50] sm:$0xff]   ;;  %v1467_v30 = vld [vmem:[%s1547_s27 + $0x58] sm:$0xff]  }
  0x15   : > { %1349 = vmatpush3.bf16.msra.mxu0 %v1450_v2  ;;  %1434 = vmatpush3.bf16.msra.mxu1 %v1450_v2  ;;  %v1481_v27 = vld [vmem:[%s1547_s27 + $0xc8] sm:$0xff]   ;;  %v1482_v29 = vld [vmem:[%s1547_s27 + $0xd0] sm:$0xff]   ;;  %v1483_v31 = vld [vmem:[%s1547_s27 + $0xd8] sm:$0xff]  }
  0x16   : > { %1350 = vmatprep.subr.bf16.mxu0 %v1451_v3  ;;  %1427 = vmatprep.subr.bf16.mxu1 %v1451_v3  ;;  %v1468_v32 = vld [vmem:[%s1547_s27 + $0x60] sm:$0xff]   ;;  %v1469_v34 = vld [vmem:[%s1547_s27 + $0x68] sm:$0xff]   ;;  %v1470_v36 = vld [vmem:[%s1547_s27 + $0x70] sm:$0xff]  }
  0x17   : > { %v1484_v33 = vld [vmem:[%s1547_s27 + $0xe0] sm:$0xff]   ;;  %v1485_v35 = vld [vmem:[%s1547_s27 + $0xe8] sm:$0xff]   ;;  %v1486_v37 = vld [vmem:[%s1547_s27 + $0xf0] sm:$0xff]  }
  0x18   : > { %v1471_v38 = vld [vmem:[%s1547_s27 + $0x78] sm:$0xff]   ;;  %v1599_v40 = vld [vmem:[%s1937_s2] ss:$0 sm:$0xff] }
  0x19   : > { %1351 = vmatpush3.bf16.msra.mxu0 %v1451_v3  ;;  %1435 = vmatpush3.bf16.msra.mxu1 %v1451_v3  ;;  %v1487_v39 = vld [vmem:[%s1547_s27 + $0xf8] sm:$0xff]  }
  0x1a   : > { %1352 = vmatprep.subr.bf16.mxu0 %v1452_v5  ;;  %1428 = vmatprep.subr.bf16.mxu1 %v1452_v5 }
  0x1d   : > { %1353 = vmatpush3.bf16.msra.mxu0 %v1452_v5  ;;  %1436 = vmatpush3.bf16.msra.mxu1 %v1452_v5 }
  0x1e   : > { %1354 = vmatprep.subr.bf16.mxu0 %v1453_v6  ;;  %1429 = vmatprep.subr.bf16.mxu1 %v1453_v6 }
  0x21   : > { %1355 = vmatpush3.bf16.msra.mxu0 %v1453_v6  ;;  %1437 = vmatpush3.bf16.msra.mxu1 %v1453_v6 }
  0x22   : > { %1356 = vmatprep.subr.bf16.mxu0 %v1454_v7  ;;  %1430 = vmatprep.subr.bf16.mxu1 %v1454_v7 }
  0x25   : > { %1357 = vmatpush3.bf16.msra.mxu0 %v1454_v7  ;;  %1438 = vmatpush3.bf16.msra.mxu1 %v1454_v7 }
  0x26   : > { %1358 = vmatprep.subr.bf16.mxu0 %v1455_v8  ;;  %1431 = vmatprep.subr.bf16.mxu1 %v1455_v8 }
  0x29   : > { %1359 = vmatpush3.bf16.msra.mxu0 %v1455_v8  ;;  %1439 = vmatpush3.bf16.msra.mxu1 %v1455_v8 }
  0x2c   : > { %1361 = vmatmul.mubr.bf16.vlgmr.msra.gmra.mxu0 %v1457_v10  ;;  %1393 = vmatmul.mubr.bf16.vlgmr.msra.gmra.mxu1 %v1473_v12 }
  0x2d   : > { %1364 = vmatprep.mubr.bf16.mxu0 %v1458_v11  ;;  %1396 = vmatprep.mubr.bf16.mxu1 %v1474_v13 }
  0x34   : > { %1365 = vmatmul.mubr.bf16.gmra.mxu0 %v1459_v14  ;;  %1397 = vmatmul.mubr.bf16.gmra.mxu1 %v1475_v16 }
  0x35   : > { %1368 = vmatprep.mubr.bf16.mxu0 %v1460_v15  ;;  %1400 = vmatprep.mubr.bf16.mxu1 %v1476_v17 }
  0x3c   : > { %1369 = vmatmul.mubr.bf16.gmra.mxu0 %v1461_v18  ;;  %1401 = vmatmul.mubr.bf16.gmra.mxu1 %v1477_v19 }
  0x3d   : > { %1372 = vmatprep.mubr.bf16.mxu0 %v1462_v20  ;;  %1404 = vmatprep.mubr.bf16.mxu1 %v1478_v21 }
  0x44   : > { %1373 = vmatmul.mubr.bf16.gmra.mxu0 %v1463_v22  ;;  %1405 = vmatmul.mubr.bf16.gmra.mxu1 %v1479_v23 }
  0x45   : > { %1376 = vmatprep.mubr.bf16.mxu0 %v1464_v24  ;;  %1408 = vmatprep.mubr.bf16.mxu1 %v1480_v25 }
  0x4c   : > { %1377 = vmatmul.mubr.bf16.gmra.mxu0 %v1465_v26  ;;  %1409 = vmatmul.mubr.bf16.gmra.mxu1 %v1481_v27 }
  0x4d   : > { %1380 = vmatprep.mubr.bf16.mxu0 %v1466_v28  ;;  %1412 = vmatprep.mubr.bf16.mxu1 %v1482_v29 }
  0x54   : > { %1381 = vmatmul.mubr.bf16.gmra.mxu0 %v1467_v30  ;;  %1413 = vmatmul.mubr.bf16.gmra.mxu1 %v1483_v31 }
  0x55   : > { %1384 = vmatprep.mubr.bf16.mxu0 %v1468_v32  ;;  %1416 = vmatprep.mubr.bf16.mxu1 %v1484_v33 }
  0x5c   : > { %1385 = vmatmul.mubr.bf16.gmra.mxu0 %v1469_v34  ;;  %1417 = vmatmul.mubr.bf16.gmra.mxu1 %v1485_v35 }
  0x5d   : > { %1388 = vmatprep.mubr.bf16.mxu0 %v1470_v36  ;;  %1420 = vmatprep.mubr.bf16.mxu1 %v1486_v37 }
  0x64   : > { %1389 = vmatmul.mubr.bf16.gmra.mxu0 %v1471_v38  ;;  %1421 = vmatmul.mubr.bf16.gmra.mxu1 %v1487_v39 }
  0xec   : > { %v1362_v41 = vpop.f32.mrf.mxu0  ;;  %v1394_v42 = vpop.f32.mrf.mxu1 }
  0xed   : > { %v583_v43 = vadd.f32 %v1362_v41, %v1599_v40  ;;  %v711_v44 = vadd.f32 %v1394_v42, %v1599_v40 }
  0xee   : > { %v574_v45 = vpop.f32.mrf.mxu0  ;;  %v702_v46 = vpop.f32.mrf.mxu1 }
  0xef   : > { %v831_v47 = vmax.f32 %v583_v43, 0.0  ;;  %v575_v48 = vadd.f32 %v1599_v40, %v574_v45  ;;  %v1610_v49 = vmax.f32 %v711_v44, 0.0  ;;  %v703_v50 = vadd.f32 %v1599_v40, %v702_v46 }
  0xf0   : > { %v1363_v51 = vpop.f32.mrf.mxu0  ;;  %v1395_v52 = vpop.f32.mrf.mxu1 }
  0xf1   : > { %895 = vst [vmem:[%s1607_s20 + $0x10] sm:$0xff] %v831_v47  ;;  %v829_v53 = vmax.f32 %v575_v48, 0.0  ;;  %v586_v54 = vadd.f32 %v1363_v51, %v1599_v40  ;;  %927 = vst [vmem:[%s1607_s20 + $0x110] sm:$0xff] %v1610_v49  ;;  %v1617_v56 = vmax.f32 %v703_v50, 0.0  ;;  %v714_v57 = vadd.f32 %v1395_v52, %v1599_v40 }
  0xf2   : > { %v577_v55 = vpop.f32.mrf.mxu0  ;;  %v705_v58 = vpop.f32.mrf.mxu1  ;;  %v1028_v16 = vmul.f32 %v831_v47, %v831_v47 }
  0xf3   : > { %893 = vst [vmem:[%s1607_s20] sm:$0xff] %v829_v53  ;;  %v832_v59 = vmax.f32 %v586_v54, 0.0  ;;  %v578_v60 = vadd.f32 %v1599_v40, %v577_v55  ;;  %v706_v61 = vadd.f32 %v1599_v40, %v705_v58  ;;  %925 = vst [vmem:[%s1607_s20 + $0x100] sm:$0xff] %v1617_v56  ;;  %v1625_v63 = vmax.f32 %v714_v57, 0.0 }
  0xf4   : > { %v1366_v62 = vpop.f32.mrf.mxu0  ;;  %v1398_v0 = vpop.f32.mrf.mxu1  ;;  %v1026_v4 = vmul.f32 %v829_v53, %v829_v53 }
  0xf5   : > { %896 = vst [vmem:[%s1607_s20 + $0x18] sm:$0xff] %v832_v59  ;;  %v830_v1 = vmax.f32 %v578_v60, 0.0  ;;  %v599_v2 = vadd.f32 %v1366_v62, %v1599_v40  ;;  %v1629_v3 = vmax.f32 %v706_v61, 0.0  ;;  %928 = vst [vmem:[%s1607_s20 + $0x118] sm:$0xff] %v1625_v63  ;;  %v727_v6 = vadd.f32 %v1398_v0, %v1599_v40 }
  0xf6   : > { %v590_v5 = vpop.f32.mrf.mxu0  ;;  %v718_v7 = vpop.f32.mrf.mxu1  ;;  %v1029_v25 = vmul.f32 %v832_v59, %v832_v59 }
  0xf7   : > { %894 = vst [vmem:[%s1607_s20 + $0x8] sm:$0xff] %v830_v1  ;;  %v957_v8 = vadd.f32 %v830_v1, %v829_v53  ;;  %v1027_v9 = vmul.f32 %v830_v1, %v830_v1  ;;  %v835_v10 = vmax.f32 %v599_v2, 0.0  ;;  %v591_v11 = vadd.f32 %v1599_v40, %v590_v5  ;;  %926 = vst [vmem:[%s1607_s20 + $0x108] sm:$0xff] %v1629_v3 }
  0xf8   : > { %v1367_v12 = vpop.f32.mrf.mxu0  ;;  %v1638_v13 = vmax.f32 %v727_v6, 0.0  ;;  %v719_v14 = vadd.f32 %v1599_v40, %v718_v7  ;;  %v1399_v15 = vpop.f32.mrf.mxu1 }
  0xf9   : > { %v958_v17 = vadd.f32 %v957_v8, %v831_v47  ;;  %v1090_v18 = vadd.f32 %v1027_v9, %v1026_v4  ;;  %899 = vst [vmem:[%s1607_s20 + $0x30] sm:$0xff] %v835_v10  ;;  %v833_v19 = vmax.f32 %v591_v11, 0.0  ;;  %v602_v20 = vadd.f32 %v1367_v12, %v1599_v40 }
  0xfa   : > { %v593_v21 = vpop.f32.mrf.mxu0  ;;  %931 = vst [vmem:[%s1607_s20 + $0x130] sm:$0xff] %v1638_v13  ;;  %v1645_v22 = vmax.f32 %v719_v14, 0.0  ;;  %v730_v23 = vadd.f32 %v1399_v15, %v1599_v40  ;;  %v721_v24 = vpop.f32.mrf.mxu1  ;;  %v1032_v54 = vmul.f32 %v835_v10, %v835_v10 }
  0xfb   : > { %v1091_v26 = vadd.f32 %v1090_v18, %v1028_v16  ;;  %897 = vst [vmem:[%s1607_s20 + $0x20] sm:$0xff] %v833_v19  ;;  %v959_v27 = vadd.f32 %v958_v17, %v832_v59  ;;  %v594_v28 = vadd.f32 %v1599_v40, %v593_v21  ;;  %v1030_v29 = vmul.f32 %v833_v19, %v833_v19 }
  0xfc   : > { %v836_v30 = vmax.f32 %v602_v20, 0.0  ;;  %v1370_v31 = vpop.f32.mrf.mxu0  ;;  %929 = vst [vmem:[%s1607_s20 + $0x120] sm:$0xff] %v1645_v22  ;;  %v1652_v32 = vmax.f32 %v730_v23, 0.0  ;;  %v722_v33 = vadd.f32 %v1599_v40, %v721_v24  ;;  %v1402_v34 = vpop.f32.mrf.mxu1 }
  0xfd   : > { %v960_v35 = vadd.f32 %v959_v27, %v833_v19  ;;  %v1092_v36 = vadd.f32 %v1091_v26, %v1029_v25  ;;  %v834_v37 = vmax.f32 %v594_v28, 0.0  ;;  %v615_v38 = vadd.f32 %v1370_v31, %v1599_v40 }
  0xfe   : > { %900 = vst [vmem:[%s1607_s20 + $0x38] sm:$0xff] %v836_v30  ;;  %v606_v39 = vpop.f32.mrf.mxu0  ;;  %932 = vst [vmem:[%s1607_s20 + $0x138] sm:$0xff] %v1652_v32  ;;  %v1659_v41 = vmax.f32 %v722_v33, 0.0  ;;  %v743_v42 = vadd.f32 %v1402_v34, %v1599_v40  ;;  %v734_v43 = vpop.f32.mrf.mxu1  ;;  %v1033_v59 = vmul.f32 %v836_v30, %v836_v30 }
  0xff   : > { %v1093_v44 = vadd.f32 %v1092_v36, %v1030_v29  ;;  %898 = vst [vmem:[%s1607_s20 + $0x28] sm:$0xff] %v834_v37  ;;  %v961_v45 = vadd.f32 %v960_v35, %v834_v37  ;;  %v1031_v46 = vmul.f32 %v834_v37, %v834_v37  ;;  %v839_v47 = vmax.f32 %v615_v38, 0.0 }
 0x100   : > { %v607_v48 = vadd.f32 %v1599_v40, %v606_v39  ;;  %v1371_v50 = vpop.f32.mrf.mxu0  ;;  %930 = vst [vmem:[%s1607_s20 + $0x128] sm:$0xff] %v1659_v41  ;;  %v1666_v51 = vmax.f32 %v743_v42, 0.0  ;;  %v735_v52 = vadd.f32 %v1599_v40, %v734_v43  ;;  %v1403_v53 = vpop.f32.mrf.mxu1 }
 0x101   : > { %v962_v55 = vadd.f32 %v961_v45, %v835_v10  ;;  %v1094_v57 = vadd.f32 %v1093_v44, %v1031_v46  ;;  %903 = vst [vmem:[%s1607_s20 + $0x50] sm:$0xff] %v839_v47  ;;  %v618_v58 = vadd.f32 %v1371_v50, %v1599_v40  ;;  %v746_v0 = vadd.f32 %v1403_v53, %v1599_v40 }
 0x102   : > { %v837_v60 = vmax.f32 %v607_v48, 0.0  ;;  %v609_v61 = vpop.f32.mrf.mxu0  ;;  %935 = vst [vmem:[%s1607_s20 + $0x150] sm:$0xff] %v1666_v51  ;;  %v1673_v62 = vmax.f32 %v735_v52, 0.0  ;;  %v737_v1 = vpop.f32.mrf.mxu1  ;;  %v1036_v26 = vmul.f32 %v839_v47, %v839_v47 }
 0x103   : > { %v1095_v2 = vadd.f32 %v1094_v57, %v1032_v54  ;;  %v963_v4 = vadd.f32 %v962_v55, %v836_v30  ;;  %v840_v5 = vmax.f32 %v618_v58, 0.0  ;;  %v610_v6 = vadd.f32 %v1599_v40, %v609_v61 }
 0x104   : > { %901 = vst [vmem:[%s1607_s20 + $0x40] sm:$0xff] %v837_v60  ;;  %v1374_v7 = vpop.f32.mrf.mxu0  ;;  %933 = vst [vmem:[%s1607_s20 + $0x140] sm:$0xff] %v1673_v62  ;;  %v1680_v8 = vmax.f32 %v746_v0, 0.0  ;;  %v738_v9 = vadd.f32 %v1599_v40, %v737_v1  ;;  %v1406_v10 = vpop.f32.mrf.mxu1  ;;  %v1034_v12 = vmul.f32 %v837_v60, %v837_v60 }
 0x105   : > { %v964_v11 = vadd.f32 %v963_v4, %v837_v60  ;;  %v1096_v14 = vadd.f32 %v1095_v2, %v1033_v59  ;;  %904 = vst [vmem:[%s1607_s20 + $0x58] sm:$0xff] %v840_v5  ;;  %v838_v15 = vmax.f32 %v610_v6, 0.0  ;;  %v631_v16 = vadd.f32 %v1374_v7, %v1599_v40 }
 0x106   : > { %v622_v17 = vpop.f32.mrf.mxu0  ;;  %936 = vst [vmem:[%s1607_s20 + $0x158] sm:$0xff] %v1680_v8  ;;  %v1687_v18 = vmax.f32 %v738_v9, 0.0  ;;  %v759_v19 = vadd.f32 %v1406_v10, %v1599_v40  ;;  %v750_v20 = vpop.f32.mrf.mxu1  ;;  %v1037_v43 = vmul.f32 %v840_v5, %v840_v5 }
 0x107   : > { %v1097_v21 = vadd.f32 %v1096_v14, %v1034_v12  ;;  %902 = vst [vmem:[%s1607_s20 + $0x48] sm:$0xff] %v838_v15  ;;  %v965_v23 = vadd.f32 %v964_v11, %v838_v15  ;;  %v1035_v24 = vmul.f32 %v838_v15, %v838_v15  ;;  %v623_v25 = vadd.f32 %v1599_v40, %v622_v17 }
 0x108   : > { %v843_v27 = vmax.f32 %v631_v16, 0.0  ;;  %v1375_v28 = vpop.f32.mrf.mxu0  ;;  %934 = vst [vmem:[%s1607_s20 + $0x148] sm:$0xff] %v1687_v18  ;;  %v1694_v29 = vmax.f32 %v759_v19, 0.0  ;;  %v751_v30 = vadd.f32 %v1599_v40, %v750_v20  ;;  %v1407_v31 = vpop.f32.mrf.mxu1 }
 0x109   : > { %v966_v33 = vadd.f32 %v965_v23, %v839_v47  ;;  %v1098_v34 = vadd.f32 %v1097_v21, %v1035_v24  ;;  %v841_v35 = vmax.f32 %v623_v25, 0.0  ;;  %v634_v36 = vadd.f32 %v1375_v28, %v1599_v40 }
 0x10a   : > { %907 = vst [vmem:[%s1607_s20 + $0x70] sm:$0xff] %v843_v27  ;;  %v625_v37 = vpop.f32.mrf.mxu0  ;;  %939 = vst [vmem:[%s1607_s20 + $0x170] sm:$0xff] %v1694_v29  ;;  %v1701_v38 = vmax.f32 %v751_v30, 0.0  ;;  %v762_v39 = vadd.f32 %v1407_v31, %v1599_v40  ;;  %v753_v42 = vpop.f32.mrf.mxu1  ;;  %v1040_v17 = vmul.f32 %v843_v27, %v843_v27 }
 0x10b   : > { %v1099_v44 = vadd.f32 %v1098_v34, %v1036_v26  ;;  %905 = vst [vmem:[%s1607_s20 + $0x60] sm:$0xff] %v841_v35  ;;  %v967_v45 = vadd.f32 %v966_v33, %v840_v5  ;;  %v844_v46 = vmax.f32 %v634_v36, 0.0  ;;  %v626_v47 = vadd.f32 %v1599_v40, %v625_v37 }
 0x10c   : > { %v1378_v48 = vpop.f32.mrf.mxu0  ;;  %937 = vst [vmem:[%s1607_s20 + $0x160] sm:$0xff] %v1701_v38  ;;  %v1708_v50 = vmax.f32 %v762_v39, 0.0  ;;  %v754_v52 = vadd.f32 %v1599_v40, %v753_v42  ;;  %v1410_v53 = vpop.f32.mrf.mxu1  ;;  %v1038_v55 = vmul.f32 %v841_v35, %v841_v35 }
 0x10d   : > { %v968_v54 = vadd.f32 %v967_v45, %v841_v35  ;;  %v1100_v57 = vadd.f32 %v1099_v44, %v1037_v43  ;;  %908 = vst [vmem:[%s1607_s20 + $0x78] sm:$0xff] %v844_v46  ;;  %v647_v58 = vadd.f32 %v1378_v48, %v1599_v40  ;;  %v842_v59 = vmax.f32 %v626_v47, 0.0 }
 0x10e   : > { %v638_v60 = vpop.f32.mrf.mxu0  ;;  %940 = vst [vmem:[%s1607_s20 + $0x178] sm:$0xff] %v1708_v50  ;;  %v1715_v61 = vmax.f32 %v754_v52, 0.0  ;;  %v775_v0 = vadd.f32 %v1410_v53, %v1599_v40  ;;  %v766_v1 = vpop.f32.mrf.mxu1  ;;  %v1041_v25 = vmul.f32 %v844_v46, %v844_v46 }
 0x10f   : > { %v1101_v2 = vadd.f32 %v1100_v57, %v1038_v55  ;;  %v847_v4 = vmax.f32 %v647_v58, 0.0  ;;  %v639_v5 = vadd.f32 %v1599_v40, %v638_v60  ;;  %v767_v6 = vadd.f32 %v1599_v40, %v766_v1  ;;  %906 = vst [vmem:[%s1607_s20 + $0x68] sm:$0xff] %v842_v59 }
 0x110   : > { %v969_v7 = vadd.f32 %v968_v54, %v842_v59  ;;  %v1039_v9 = vmul.f32 %v842_v59, %v842_v59  ;;  %v1379_v10 = vpop.f32.mrf.mxu0  ;;  %938 = vst [vmem:[%s1607_s20 + $0x168] sm:$0xff] %v1715_v61  ;;  %v1723_v11 = vmax.f32 %v775_v0, 0.0  ;;  %v1411_v12 = vpop.f32.mrf.mxu1 }
 0x111   : > { %911 = vst [vmem:[%s1607_s20 + $0x90] sm:$0xff] %v847_v4  ;;  %v845_v14 = vmax.f32 %v639_v5, 0.0  ;;  %v650_v15 = vadd.f32 %v1379_v10, %v1599_v40  ;;  %v1727_v16 = vmax.f32 %v767_v6, 0.0  ;;  %v778_v23 = vadd.f32 %v1411_v12, %v1599_v40 }
 0x112   : > { %v970_v19 = vadd.f32 %v969_v7, %v843_v27  ;;  %v1102_v20 = vadd.f32 %v1101_v2, %v1039_v9  ;;  %v641_v21 = vpop.f32.mrf.mxu0  ;;  %943 = vst [vmem:[%s1607_s20 + $0x190] sm:$0xff] %v1723_v11  ;;  %v769_v24 = vpop.f32.mrf.mxu1  ;;  %v1044_v0 = vmul.f32 %v847_v4, %v847_v4 }
 0x113   : > { %909 = vst [vmem:[%s1607_s20 + $0x80] sm:$0xff] %v845_v14  ;;  %v848_v26 = vmax.f32 %v650_v15, 0.0  ;;  %v642_v28 = vadd.f32 %v1599_v40, %v641_v21  ;;  %941 = vst [vmem:[%s1607_s20 + $0x180] sm:$0xff] %v1727_v16  ;;  %v1736_v33 = vmax.f32 %v778_v23, 0.0  ;;  %v770_v34 = vadd.f32 %v1599_v40, %v769_v24 }
 0x114   : > { %v1103_v30 = vadd.f32 %v1102_v20, %v1040_v17  ;;  %v971_v31 = vadd.f32 %v970_v19, %v844_v46  ;;  %v1382_v27 = vpop.f32.mrf.mxu0  ;;  %v1414_v35 = vpop.f32.mrf.mxu1  ;;  %v1042_v43 = vmul.f32 %v845_v14, %v845_v14 }
 0x115   : > { %912 = vst [vmem:[%s1607_s20 + $0x98] sm:$0xff] %v848_v26  ;;  %v846_v36 = vmax.f32 %v642_v28, 0.0  ;;  %v663_v37 = vadd.f32 %v1382_v27, %v1599_v40  ;;  %v791_v39 = vadd.f32 %v1414_v35, %v1599_v40  ;;  %944 = vst [vmem:[%s1607_s20 + $0x198] sm:$0xff] %v1736_v33  ;;  %v1744_v46 = vmax.f32 %v770_v34, 0.0 }
 0x116   : > { %v972_v42 = vadd.f32 %v971_v31, %v845_v14  ;;  %v1104_v44 = vadd.f32 %v1103_v30, %v1041_v25  ;;  %v654_v45 = vpop.f32.mrf.mxu0  ;;  %v782_v47 = vpop.f32.mrf.mxu1  ;;  %v1045_v19 = vmul.f32 %v848_v26, %v848_v26 }
 0x117   : > { %910 = vst [vmem:[%s1607_s20 + $0x88] sm:$0xff] %v846_v36  ;;  %v1043_v48 = vmul.f32 %v846_v36, %v846_v36  ;;  %v851_v52 = vmax.f32 %v663_v37, 0.0  ;;  %v655_v53 = vadd.f32 %v1599_v40, %v654_v45  ;;  %v1748_v54 = vmax.f32 %v791_v39, 0.0  ;;  %942 = vst [vmem:[%s1607_s20 + $0x188] sm:$0xff] %v1744_v46 }
 0x118   : > { %v1105_v55 = vadd.f32 %v1104_v44, %v1042_v43  ;;  %v973_v57 = vadd.f32 %v972_v42, %v846_v36  ;;  %v1383_v58 = vpop.f32.mrf.mxu0  ;;  %v783_v59 = vadd.f32 %v1599_v40, %v782_v47  ;;  %v1415_v60 = vpop.f32.mrf.mxu1 }
 0x119   : > { %915 = vst [vmem:[%s1607_s20 + $0xb0] sm:$0xff] %v851_v52  ;;  %v849_v1 = vmax.f32 %v655_v53, 0.0  ;;  %v666_v2 = vadd.f32 %v1383_v58, %v1599_v40  ;;  %947 = vst [vmem:[%s1607_s20 + $0x1b0] sm:$0xff] %v1748_v54  ;;  %v794_v10 = vadd.f32 %v1415_v60, %v1599_v40 }
 0x11a   : > { %v974_v5 = vadd.f32 %v973_v57, %v847_v4  ;;  %v1106_v6 = vadd.f32 %v1105_v55, %v1043_v48  ;;  %v657_v7 = vpop.f32.mrf.mxu0  ;;  %v1757_v9 = vmax.f32 %v783_v59, 0.0  ;;  %v785_v12 = vpop.f32.mrf.mxu1  ;;  %v1048_v59 = vmul.f32 %v851_v52, %v851_v52 }
 0x11b   : > { %913 = vst [vmem:[%s1607_s20 + $0xa0] sm:$0xff] %v849_v1  ;;  %v852_v14 = vmax.f32 %v666_v2, 0.0  ;;  %v658_v15 = vadd.f32 %v1599_v40, %v657_v7  ;;  %v786_v17 = vadd.f32 %v1599_v40, %v785_v12  ;;  %v1765_v23 = vmax.f32 %v794_v10, 0.0 }
 0x11c   : > { %v1107_v20 = vadd.f32 %v1106_v6, %v1044_v0  ;;  %v975_v21 = vadd.f32 %v974_v5, %v848_v26  ;;  %v1386_v4 = vpop.f32.mrf.mxu0  ;;  %945 = vst [vmem:[%s1607_s20 + $0x1a0] sm:$0xff] %v1757_v9  ;;  %v1418_v24 = vpop.f32.mrf.mxu1  ;;  %v1046_v27 = vmul.f32 %v849_v1, %v849_v1 }
 0x11d   : > { %916 = vst [vmem:[%s1607_s20 + $0xb8] sm:$0xff] %v852_v14  ;;  %v850_v25 = vmax.f32 %v658_v15, 0.0  ;;  %v679_v28 = vadd.f32 %v1386_v4, %v1599_v40  ;;  %v1769_v30 = vmax.f32 %v786_v17, 0.0  ;;  %948 = vst [vmem:[%s1607_s20 + $0x1b8] sm:$0xff] %v1765_v23  ;;  %v807_v26 = vadd.f32 %v1418_v24, %v1599_v40 }
 0x11e   : > { %v976_v31 = vadd.f32 %v975_v21, %v849_v1  ;;  %v1108_v34 = vadd.f32 %v1107_v20, %v1045_v19  ;;  %v670_v35 = vpop.f32.mrf.mxu0  ;;  %v798_v36 = vpop.f32.mrf.mxu1  ;;  %v1049_v12 = vmul.f32 %v852_v14, %v852_v14 }
 0x11f   : > { %914 = vst [vmem:[%s1607_s20 + $0xa8] sm:$0xff] %v850_v25  ;;  %v1047_v37 = vmul.f32 %v850_v25, %v850_v25  ;;  %v855_v39 = vmax.f32 %v679_v28, 0.0  ;;  %v671_v42 = vadd.f32 %v1599_v40, %v670_v35  ;;  %946 = vst [vmem:[%s1607_s20 + $0x1a8] sm:$0xff] %v1769_v30  ;;  %v1778_v47 = vmax.f32 %v807_v26, 0.0 }
 0x120   : > { %v1109_v43 = vadd.f32 %v1108_v34, %v1046_v27  ;;  %v977_v44 = vadd.f32 %v976_v31, %v850_v25  ;;  %v1387_v45 = vpop.f32.mrf.mxu0  ;;  %v799_v48 = vadd.f32 %v1599_v40, %v798_v36  ;;  %v1419_v53 = vpop.f32.mrf.mxu1 }
 0x121   : > { %919 = vst [vmem:[%s1607_s20 + $0xd0] sm:$0xff] %v855_v39  ;;  %v853_v55 = vmax.f32 %v671_v42, 0.0  ;;  %v682_v57 = vadd.f32 %v1387_v45, %v1599_v40  ;;  %v810_v58 = vadd.f32 %v1419_v53, %v1599_v40  ;;  %951 = vst [vmem:[%s1607_s20 + $0x1d0] sm:$0xff] %v1778_v47 }
 0x122   : > { %v978_v60 = vadd.f32 %v977_v44, %v851_v52  ;;  %v1110_v0 = vadd.f32 %v1109_v43, %v1047_v37  ;;  %v673_v1 = vpop.f32.mrf.mxu0  ;;  %v1786_v2 = vmax.f32 %v799_v48, 0.0  ;;  %v801_v5 = vpop.f32.mrf.mxu1 }
 0x123   : > { %917 = vst [vmem:[%s1607_s20 + $0xc0] sm:$0xff] %v853_v55  ;;  %v856_v6 = vmax.f32 %v682_v57, 0.0  ;;  %v674_v7 = vadd.f32 %v1599_v40, %v673_v1  ;;  %v1790_v10 = vmax.f32 %v810_v58, 0.0  ;;  %v802_v19 = vadd.f32 %v1599_v40, %v801_v5 }
 0x124   : > { %v1111_v15 = vadd.f32 %v1110_v0, %v1048_v59  ;;  %v979_v17 = vadd.f32 %v978_v60, %v852_v14  ;;  %v1390_v52 = vpop.f32.mrf.mxu0  ;;  %949 = vst [vmem:[%s1607_s20 + $0x1c0] sm:$0xff] %v1786_v2  ;;  %v1422_v20 = vpop.f32.mrf.mxu1  ;;  %v1050_v21 = vmul.f32 %v853_v55, %v853_v55  ;;  %v1052_v58 = vmul.f32 %v855_v39, %v855_v39 }
 0x125   : > { %920 = vst [vmem:[%s1607_s20 + $0xd8] sm:$0xff] %v856_v6  ;;  %v854_v4 = vmax.f32 %v674_v7, 0.0  ;;  %v695_v24 = vadd.f32 %v1390_v52, %v1599_v40  ;;  %952 = vst [vmem:[%s1607_s20 + $0x1d8] sm:$0xff] %v1790_v10  ;;  %v1799_v14 = vmax.f32 %v802_v19, 0.0  ;;  %v823_v27 = vadd.f32 %v1422_v20, %v1599_v40 }
 0x126   : > { %v980_v25 = vadd.f32 %v979_v17, %v853_v55  ;;  %v1112_v28 = vadd.f32 %v1111_v15, %v1049_v12  ;;  %v686_v31 = vpop.f32.mrf.mxu0  ;;  %v814_v34 = vpop.f32.mrf.mxu1  ;;  %v1053_v7 = vmul.f32 %v856_v6, %v856_v6 }
 0x127   : > { %918 = vst [vmem:[%s1607_s20 + $0xc8] sm:$0xff] %v854_v4  ;;  %v1051_v35 = vmul.f32 %v854_v4, %v854_v4  ;;  %v859_v26 = vmax.f32 %v695_v24, 0.0  ;;  %v687_v36 = vadd.f32 %v1599_v40, %v686_v31  ;;  %v815_v37 = vadd.f32 %v1599_v40, %v814_v34  ;;  %950 = vst [vmem:[%s1607_s20 + $0x1c8] sm:$0xff] %v1799_v14 }
 0x128   : > { %v1113_v42 = vadd.f32 %v1112_v28, %v1050_v21  ;;  %v981_v43 = vadd.f32 %v980_v25, %v854_v4  ;;  %v1391_v44 = vpop.f32.mrf.mxu0  ;;  %v1807_v45 = vmax.f32 %v823_v27, 0.0  ;;  %v1423_v48 = vpop.f32.mrf.mxu1 }
 0x129   : > { %923 = vst [vmem:[%s1607_s20 + $0xf0] sm:$0xff] %v859_v26  ;;  %v857_v53 = vmax.f32 %v687_v36, 0.0  ;;  %v698_v55 = vadd.f32 %v1391_v44, %v1599_v40  ;;  %v1811_v57 = vmax.f32 %v815_v37, 0.0  ;;  %v826_v1 = vadd.f32 %v1423_v48, %v1599_v40 }
 0x12a   : > { %v982_v59 = vadd.f32 %v981_v43, %v855_v39  ;;  %v1114_v60 = vadd.f32 %v1113_v42, %v1051_v35  ;;  %v689_v0 = vpop.f32.mrf.mxu0  ;;  %955 = vst [vmem:[%s1607_s20 + $0x1f0] sm:$0xff] %v1807_v45  ;;  %v817_v5 = vpop.f32.mrf.mxu1  ;;  %v1058_v42 = vmul.f32 %v1617_v56, %v1617_v56 }
 0x12b   : > { %921 = vst [vmem:[%s1607_s20 + $0xe0] sm:$0xff] %v857_v53  ;;  %v860_v12 = vmax.f32 %v698_v55, 0.0  ;;  %v690_v15 = vadd.f32 %v1599_v40, %v689_v0  ;;  %953 = vst [vmem:[%s1607_s20 + $0x1e0] sm:$0xff] %v1811_v57  ;;  %v1820_v39 = vmax.f32 %v826_v1, 0.0  ;;  %v818_v19 = vadd.f32 %v1599_v40, %v817_v5 }
 0x12c   : > { %v1115_v17 = vadd.f32 %v1114_v60, %v1052_v58  ;;  %v983_v52 = vadd.f32 %v982_v59, %v856_v6  ;;  %v1054_v4 = vmul.f32 %v857_v53, %v857_v53  ;;  %v1056_v6 = vmul.f32 %v859_v26, %v859_v26 }
 0x12d   : > { %924 = vst [vmem:[%s1607_s20 + $0xf8] sm:$0xff] %v860_v12  ;;  %v858_v20 = vmax.f32 %v690_v15, 0.0  ;;  %956 = vst [vmem:[%s1607_s20 + $0x1f8] sm:$0xff] %v1820_v39  ;;  %v1826_v25 = vmax.f32 %v818_v19, 0.0  ;;  %v1057_v36 = vmul.f32 %v860_v12, %v860_v12  ;;  %v1060_v58 = vmul.f32 %v1610_v49, %v1610_v49 }
 0x12e   : > { %v984_v21 = vadd.f32 %v983_v52, %v857_v53  ;;  %v1116_v24 = vadd.f32 %v1115_v17, %v1053_v7  ;;  %v1059_v53 = vmul.f32 %v1629_v3, %v1629_v3  ;;  %v1061_v60 = vmul.f32 %v1625_v63, %v1625_v63 }
 0x12f   : > { %922 = vst [vmem:[%s1607_s20 + $0xe8] sm:$0xff] %v858_v20  ;;  %v1055_v28 = vmul.f32 %v858_v20, %v858_v20  ;;  %954 = vst [vmem:[%s1607_s20 + $0x1e8] sm:$0xff] %v1826_v25  ;;  %v1062_v5 = vmul.f32 %v1645_v22, %v1645_v22  ;;  %v1063_v15 = vmul.f32 %v1659_v41, %v1659_v41 }
 0x130   : > { %v1117_v31 = vadd.f32 %v1116_v24, %v1054_v4  ;;  %v985_v27 = vadd.f32 %v984_v21, %v858_v20  ;;  %v1066_v21 = vmul.f32 %v1673_v62, %v1673_v62 }
 0x132   : > { %v986_v34 = vadd.f32 %v985_v27, %v859_v26  ;;  %v1118_v35 = vadd.f32 %v1117_v31, %v1055_v28  ;;  %v1067_v28 = vmul.f32 %v1687_v18, %v1687_v18 }
 0x134   : > { %v1119_v40 = vadd.f32 %v1118_v35, %v1056_v6  ;;  %v987_v37 = vadd.f32 %v986_v34, %v860_v12  ;;  %v1070_v35 = vmul.f32 %v1701_v38, %v1701_v38 }
 0x136   : > { %v988_v43 = vadd.f32 %v987_v37, %v1617_v56  ;;  %v1120_v44 = vadd.f32 %v1119_v40, %v1057_v36  ;;  %v1071_v37 = vmul.f32 %v1715_v61, %v1715_v61 }
 0x138   : > { %v989_v48 = vadd.f32 %v988_v43, %v1629_v3  ;;  %v1121_v55 = vadd.f32 %v1120_v44, %v1058_v42 }
 0x13a   : > { %v990_v26 = vadd.f32 %v989_v48, %v1610_v49  ;;  %v1122_v59 = vadd.f32 %v1121_v55, %v1059_v53  ;;  %v1064_v49 = vmul.f32 %v1638_v13, %v1638_v13  ;;  %v1074_v53 = vmul.f32 %v1727_v16, %v1727_v16 }
 0x13c   : > { %v1123_v0 = vadd.f32 %v1122_v59, %v1060_v58  ;;  %v991_v1 = vadd.f32 %v990_v26, %v1625_v63  ;;  %v1065_v63 = vmul.f32 %v1652_v32, %v1652_v32  ;;  %v1075_v26 = vmul.f32 %v1744_v46, %v1744_v46 }
 0x13e   : > { %v992_v56 = vadd.f32 %v991_v1, %v1645_v22  ;;  %v1124_v7 = vadd.f32 %v1123_v0, %v1061_v60 }
 0x140   : > { %v1125_v3 = vadd.f32 %v1124_v7, %v1062_v5  ;;  %v993_v12 = vadd.f32 %v992_v56, %v1659_v41  ;;  %v1078_v56 = vmul.f32 %v1757_v9, %v1757_v9 }
 0x142   : > { %v994_v17 = vadd.f32 %v993_v12, %v1638_v13  ;;  %v1126_v52 = vadd.f32 %v1125_v3, %v1063_v15  ;;  %v1068_v13 = vmul.f32 %v1666_v51, %v1666_v51  ;;  %v1079_v3 = vmul.f32 %v1769_v30, %v1769_v30 }
 0x144   : > { %v1127_v19 = vadd.f32 %v1126_v52, %v1064_v49  ;;  %v995_v20 = vadd.f32 %v994_v17, %v1652_v32  ;;  %v1069_v32 = vmul.f32 %v1680_v8, %v1680_v8  ;;  %v1082_v52 = vmul.f32 %v1786_v2, %v1786_v2 }
 0x146   : > { %v996_v22 = vadd.f32 %v995_v20, %v1673_v62  ;;  %v1128_v4 = vadd.f32 %v1127_v19, %v1065_v63  ;;  %v1083_v20 = vmul.f32 %v1799_v14, %v1799_v14 }
 0x148   : > { %v1129_v24 = vadd.f32 %v1128_v4, %v1066_v21  ;;  %v997_v41 = vadd.f32 %v996_v22, %v1687_v18 }
 0x14a   : > { %v998_v31 = vadd.f32 %v997_v41, %v1666_v51  ;;  %v1130_v27 = vadd.f32 %v1129_v24, %v1067_v28  ;;  %v1072_v51 = vmul.f32 %v1694_v29, %v1694_v29  ;;  %v1086_v41 = vmul.f32 %v1811_v57, %v1811_v57 }
 0x14c   : > { %v1131_v6 = vadd.f32 %v1130_v27, %v1068_v13  ;;  %v999_v34 = vadd.f32 %v998_v31, %v1680_v8  ;;  %v1073_v8 = vmul.f32 %v1708_v50, %v1708_v50  ;;  %v1088_v31 = vmul.f32 %v1807_v45, %v1807_v45 }
 0x14e   : > { %v1000_v62 = vadd.f32 %v999_v34, %v1701_v38  ;;  %v1132_v36 = vadd.f32 %v1131_v6, %v1069_v32 }
 0x150   : > { %v1133_v40 = vadd.f32 %v1132_v36, %v1070_v35  ;;  %v1001_v18 = vadd.f32 %v1000_v62, %v1715_v61 }
 0x152   : > { %v1002_v42 = vadd.f32 %v1001_v18, %v1694_v29  ;;  %v1134_v43 = vadd.f32 %v1133_v40, %v1071_v37  ;;  %v1076_v29 = vmul.f32 %v1723_v11, %v1723_v11 }
 0x154   : > { %v1135_v44 = vadd.f32 %v1134_v43, %v1072_v51  ;;  %v1003_v48 = vadd.f32 %v1002_v42, %v1708_v50  ;;  %v1077_v50 = vmul.f32 %v1736_v33, %v1736_v33 }
 0x156   : > { %v1004_v38 = vadd.f32 %v1003_v48, %v1727_v16  ;;  %v1136_v55 = vadd.f32 %v1135_v44, %v1073_v8 }
 0x158   : > { %v1137_v58 = vadd.f32 %v1136_v55, %v1074_v53  ;;  %v1005_v61 = vadd.f32 %v1004_v38, %v1744_v46 }
 0x15a   : > { %v1006_v59 = vadd.f32 %v1005_v61, %v1723_v11  ;;  %v1138_v60 = vadd.f32 %v1137_v58, %v1075_v26  ;;  %v1080_v11 = vmul.f32 %v1748_v54, %v1748_v54 }
 0x15c   : > { %v1139_v0 = vadd.f32 %v1138_v60, %v1076_v29  ;;  %v1007_v1 = vadd.f32 %v1006_v59, %v1736_v33  ;;  %v1081_v33 = vmul.f32 %v1765_v23, %v1765_v23 }
 0x15e   : > { %v1008_v16 = vadd.f32 %v1007_v1, %v1757_v9  ;;  %v1140_v5 = vadd.f32 %v1139_v0, %v1077_v50 }
 0x160   : > { %v1141_v7 = vadd.f32 %v1140_v5, %v1078_v56  ;;  %v1009_v46 = vadd.f32 %v1008_v16, %v1769_v30 }
 0x162   : > { %v1010_v12 = vadd.f32 %v1009_v46, %v1748_v54  ;;  %v1142_v15 = vadd.f32 %v1141_v7, %v1079_v3  ;;  %v1084_v54 = vmul.f32 %v1778_v47, %v1778_v47 }
 0x164   : > { %v1143_v49 = vadd.f32 %v1142_v15, %v1080_v11  ;;  %v1011_v17 = vadd.f32 %v1010_v12, %v1765_v23  ;;  %v1085_v23 = vmul.f32 %v1790_v10, %v1790_v10 }
 0x166   : > { %v1012_v9 = vadd.f32 %v1011_v17, %v1786_v2  ;;  %v1144_v63 = vadd.f32 %v1143_v49, %v1081_v33 }
 0x168   : > { %v1145_v19 = vadd.f32 %v1144_v63, %v1082_v52  ;;  %v1013_v30 = vadd.f32 %v1012_v9, %v1799_v14 }
 0x16a   : > { %v1014_v22 = vadd.f32 %v1013_v30, %v1778_v47  ;;  %v1146_v21 = vadd.f32 %v1145_v19, %v1083_v20  ;;  %v1087_v47 = vmul.f32 %v1826_v25, %v1826_v25 }
 0x16c   : > { %v1147_v4 = vadd.f32 %v1146_v21, %v1084_v54  ;;  %v1015_v2 = vadd.f32 %v1014_v22, %v1790_v10  ;;  %v1089_v10 = vmul.f32 %v1820_v39, %v1820_v39 }
 0x16e   : > { %v1016_v24 = vadd.f32 %v1015_v2, %v1811_v57  ;;  %v1148_v28 = vadd.f32 %v1147_v4, %v1085_v23 }
 0x170   : > { %v1149_v14 = vadd.f32 %v1148_v28, %v1086_v41  ;;  %v1017_v13 = vadd.f32 %v1016_v24, %v1826_v25 }
 0x172   : > { %v1018_v27 = vadd.f32 %v1017_v13, %v1807_v45  ;;  %v1150_v32 = vadd.f32 %v1149_v14, %v1087_v47 }
 0x174   : > { %v1019_v6 = vadd.f32 %v1018_v27, %v1820_v39  ;;  %v1151_v57 = vadd.f32 %v1150_v32, %v1088_v31 }
 0x176   : > { %v1020_v34 = vrot.slane %v1019_v6, 4  ;;  %v1152_v62 = vadd.f32 %v1151_v57, %v1089_v10 }
 0x178   : > { %v1021_v35 = vadd.f32 %v1020_v34, %v1019_v6  ;;  %v1153_v36 = vrot.slane %v1152_v62, 4 }
 0x17a   : > { %v1022_v40 = vrot.slane %v1021_v35, 2  ;;  %v1154_v18 = vadd.f32 %v1153_v36, %v1152_v62 }
 0x17c   : > { %v1023_v25 = vadd.f32 %v1022_v40, %v1021_v35  ;;  %v1155_v37 = vrot.slane %v1154_v18, 2 }
 0x17e   : > { %v1024_v51 = vrot.slane %v1023_v25, 1  ;;  %v1156_v42 = vadd.f32 %v1155_v37, %v1154_v18 }
 0x180   : > { %v1157_v45 = vrot.slane %v1156_v42, 1  ;;  %v1025_v43 = vadd.f32 %v1024_v51, %v1023_v25 }
 0x182   : > { %v1158_v8 = vadd.f32 %v1157_v45, %v1156_v42 }
 0x184   : > { %v1160_v39 = vsel %vm1159_vm0, %v1025_v43, %v1158_v8 }
 0x185   : > { %v1162_v44 = vsel %vm1161_vm1, %v1160_v39, 0.0 }
 0x186   : > { %1163 = vst [vmem:[%s211_s23] sm:$0xff] %v1162_v44 }
 0x187 PF: > { %s15_s15 = sadd.s32 1, %s1494_s15  }
 0x188   : > { %p12_p5 = scmp.ge.s32.totalorder %s15_s15, 6  }
 0x18a   :  { %14 = sbr.rel (!%p12_p5) target bundleno = 1 (0x1), region = 74 }

// kernel: forward.6
= control target key start
LH: loop header
LB: loop body
LE: loop exit
PB: predicated region body
PF: predicated region fallthrough
CT: control target
= control target key end

     0   :  { %vm963_vm0 = vcmask 1040384   ;;  %vm965_vm1 = vcmask 1041408   ;;  %s1794_s1 = inlined_call_operand.vmem [shape: bf16[128,128], index: 1, kind: input, shape index: {}]   ;;  %s1795_s0 = inlined_call_operand.vmem [shape: bf16[512,128], index: 0, kind: input, shape index: {}]   ;;  %s1796_s2 = inlined_call_operand.vmem [shape: f32[1,128], index: 2, kind: input, shape index: {}]   ;;  %s1797_s3 = inlined_call_operand.vmem [shape: f32[512,128], index: 3, kind: output, shape index: {0}]   ;;  %s1798_s4 = inlined_call_operand.vmem [shape: f32[1,8,128], index: 4, kind: output, shape index: {1}]  }
   0x1   :  { %v1153_v0 = vld [vmem:[%s1794_s1 + $0x38] sm:$0xff]   ;;  %v1154_v1 = vld [vmem:[%s1794_s1 + $0x30] sm:$0xff]   ;;  %v1155_v2 = vld [vmem:[%s1794_s1 + $0x28] sm:$0xff]  }
   0x2   :  { %1057 = vmatprep.subr.bf16.mxu0 %v1153_v0  ;;  %1137 = vmatprep.subr.bf16.mxu1 %v1153_v0  ;;  %v1156_v3 = vld [vmem:[%s1794_s1 + $0x20] sm:$0xff]   ;;  %v1157_v5 = vld [vmem:[%s1794_s1 + $0x18] sm:$0xff]   ;;  %v1158_v6 = vld [vmem:[%s1794_s1 + $0x10] sm:$0xff]  }
   0x3   :  { %1058 = vmatpush3.bf16.msra.mxu0 %v1153_v0  ;;  %1145 = vmatpush3.bf16.msra.mxu1 %v1153_v0  ;;  %v1161_v4 = vld [vmem:[%s1795_s0] sm:$0xff]   ;;  %v1159_v7 = vld [vmem:[%s1794_s1 + $0x8] sm:$0xff]   ;;  %v1163_v11 = vld [vmem:[%s1795_s0 + $0x10] sm:$0xff]  }
   0x4   :  { %1059 = vmatprep.subr.bf16.mxu0 %v1154_v1  ;;  %1138 = vmatprep.subr.bf16.mxu1 %v1154_v1  ;;  %v1160_v8 = vld [vmem:[%s1794_s1] sm:$0xff]   ;;  %v1162_v10 = vld [vmem:[%s1795_s0 + $0x8] sm:$0xff]   ;;  %v1179_v13 = vld [vmem:[%s1795_s0 + $0x90] sm:$0xff]  }
   0x5   :  { %1073 = vmatprep.mubr.bf16.mxu0 %v1161_v4  ;;  %v1177_v9 = vld [vmem:[%s1795_s0 + $0x80] sm:$0xff]   ;;  %v1178_v12 = vld [vmem:[%s1795_s0 + $0x88] sm:$0xff]   ;;  %v1164_v14 = vld [vmem:[%s1795_s0 + $0x18] sm:$0xff]  }
   0x6   :  { %1105 = vmatprep.mubr.bf16.mxu1 %v1177_v9  ;;  %v1165_v15 = vld [vmem:[%s1795_s0 + $0x20] sm:$0xff]   ;;  %v1180_v16 = vld [vmem:[%s1795_s0 + $0x98] sm:$0xff]   ;;  %v1166_v18 = vld [vmem:[%s1795_s0 + $0x28] sm:$0xff]  }
   0x7   :  { %1060 = vmatpush3.bf16.msra.mxu0 %v1154_v1  ;;  %1146 = vmatpush3.bf16.msra.mxu1 %v1154_v1  ;;  %v1181_v17 = vld [vmem:[%s1795_s0 + $0xa0] sm:$0xff]   ;;  %v1182_v19 = vld [vmem:[%s1795_s0 + $0xa8] sm:$0xff]   ;;  %v1167_v20 = vld [vmem:[%s1795_s0 + $0x30] sm:$0xff]  }
   0x8   :  { %1061 = vmatprep.subr.bf16.mxu0 %v1155_v2  ;;  %1139 = vmatprep.subr.bf16.mxu1 %v1155_v2  ;;  %v1183_v21 = vld [vmem:[%s1795_s0 + $0xb0] sm:$0xff]   ;;  %v1168_v22 = vld [vmem:[%s1795_s0 + $0x38] sm:$0xff]   ;;  %v1169_v24 = vld [vmem:[%s1795_s0 + $0x40] sm:$0xff]  }
   0x9   :  { %v1184_v23 = vld [vmem:[%s1795_s0 + $0xb8] sm:$0xff]   ;;  %v1185_v25 = vld [vmem:[%s1795_s0 + $0xc0] sm:$0xff]   ;;  %v1170_v26 = vld [vmem:[%s1795_s0 + $0x48] sm:$0xff]  }
   0xa   :  { %v1186_v27 = vld [vmem:[%s1795_s0 + $0xc8] sm:$0xff]   ;;  %v1171_v28 = vld [vmem:[%s1795_s0 + $0x50] sm:$0xff]   ;;  %v1172_v30 = vld [vmem:[%s1795_s0 + $0x58] sm:$0xff]  }
   0xb   :  { %1062 = vmatpush3.bf16.msra.mxu0 %v1155_v2  ;;  %1147 = vmatpush3.bf16.msra.mxu1 %v1155_v2  ;;  %v1187_v29 = vld [vmem:[%s1795_s0 + $0xd0] sm:$0xff]   ;;  %v1188_v31 = vld [vmem:[%s1795_s0 + $0xd8] sm:$0xff]   ;;  %v1173_v32 = vld [vmem:[%s1795_s0 + $0x60] sm:$0xff]  }
   0xc   :  { %1063 = vmatprep.subr.bf16.mxu0 %v1156_v3  ;;  %1140 = vmatprep.subr.bf16.mxu1 %v1156_v3  ;;  %v1189_v33 = vld [vmem:[%s1795_s0 + $0xe0] sm:$0xff]   ;;  %v1174_v34 = vld [vmem:[%s1795_s0 + $0x68] sm:$0xff]   ;;  %v1175_v36 = vld [vmem:[%s1795_s0 + $0x70] sm:$0xff]  }
   0xd   :  { %v1190_v35 = vld [vmem:[%s1795_s0 + $0xe8] sm:$0xff]   ;;  %v1191_v37 = vld [vmem:[%s1795_s0 + $0xf0] sm:$0xff]   ;;  %v1176_v38 = vld [vmem:[%s1795_s0 + $0x78] sm:$0xff]  }
   0xe   :  { %v1192_v39 = vld [vmem:[%s1795_s0 + $0xf8] sm:$0xff]   ;;  %v1341_v40 = vld [vmem:[%s1796_s2] ss:$0 sm:$0xff] }
   0xf   :  { %1064 = vmatpush3.bf16.msra.mxu0 %v1156_v3  ;;  %1148 = vmatpush3.bf16.msra.mxu1 %v1156_v3 }
  0x10   :  { %1065 = vmatprep.subr.bf16.mxu0 %v1157_v5  ;;  %1141 = vmatprep.subr.bf16.mxu1 %v1157_v5 }
  0x13   :  { %1066 = vmatpush3.bf16.msra.mxu0 %v1157_v5  ;;  %1149 = vmatpush3.bf16.msra.mxu1 %v1157_v5 }
  0x14   :  { %1067 = vmatprep.subr.bf16.mxu0 %v1158_v6  ;;  %1142 = vmatprep.subr.bf16.mxu1 %v1158_v6 }
  0x17   :  { %1068 = vmatpush3.bf16.msra.mxu0 %v1158_v6  ;;  %1150 = vmatpush3.bf16.msra.mxu1 %v1158_v6 }
  0x18   :  { %1069 = vmatprep.subr.bf16.mxu0 %v1159_v7  ;;  %1143 = vmatprep.subr.bf16.mxu1 %v1159_v7 }
  0x1b   :  { %1070 = vmatpush3.bf16.msra.mxu0 %v1159_v7  ;;  %1151 = vmatpush3.bf16.msra.mxu1 %v1159_v7 }
  0x1c   :  { %1071 = vmatprep.subr.bf16.mxu0 %v1160_v8  ;;  %1144 = vmatprep.subr.bf16.mxu1 %v1160_v8 }
  0x1f   :  { %1072 = vmatpush3.bf16.msra.mxu0 %v1160_v8  ;;  %1152 = vmatpush3.bf16.msra.mxu1 %v1160_v8 }
  0x22   :  { %1074 = vmatmul.mubr.bf16.vlgmr.msra.gmra.mxu0 %v1162_v10  ;;  %1106 = vmatmul.mubr.bf16.vlgmr.msra.gmra.mxu1 %v1178_v12 }
  0x23   :  { %1077 = vmatprep.mubr.bf16.mxu0 %v1163_v11  ;;  %1109 = vmatprep.mubr.bf16.mxu1 %v1179_v13 }
  0x2a   :  { %1078 = vmatmul.mubr.bf16.gmra.mxu0 %v1164_v14  ;;  %1110 = vmatmul.mubr.bf16.gmra.mxu1 %v1180_v16 }
  0x2b   :  { %1081 = vmatprep.mubr.bf16.mxu0 %v1165_v15  ;;  %1113 = vmatprep.mubr.bf16.mxu1 %v1181_v17 }
  0x32   :  { %1082 = vmatmul.mubr.bf16.gmra.mxu0 %v1166_v18  ;;  %1114 = vmatmul.mubr.bf16.gmra.mxu1 %v1182_v19 }
  0x33   :  { %1085 = vmatprep.mubr.bf16.mxu0 %v1167_v20  ;;  %1117 = vmatprep.mubr.bf16.mxu1 %v1183_v21 }
  0x3a   :  { %1086 = vmatmul.mubr.bf16.gmra.mxu0 %v1168_v22  ;;  %1118 = vmatmul.mubr.bf16.gmra.mxu1 %v1184_v23 }
  0x3b   :  { %1089 = vmatprep.mubr.bf16.mxu0 %v1169_v24  ;;  %1121 = vmatprep.mubr.bf16.mxu1 %v1185_v25 }
  0x42   :  { %1090 = vmatmul.mubr.bf16.gmra.mxu0 %v1170_v26  ;;  %1122 = vmatmul.mubr.bf16.gmra.mxu1 %v1186_v27 }
  0x43   :  { %1093 = vmatprep.mubr.bf16.mxu0 %v1171_v28  ;;  %1125 = vmatprep.mubr.bf16.mxu1 %v1187_v29 }
  0x4a   :  { %1094 = vmatmul.mubr.bf16.gmra.mxu0 %v1172_v30  ;;  %1126 = vmatmul.mubr.bf16.gmra.mxu1 %v1188_v31 }
  0x4b   :  { %1097 = vmatprep.mubr.bf16.mxu0 %v1173_v32  ;;  %1129 = vmatprep.mubr.bf16.mxu1 %v1189_v33 }
  0x52   :  { %1098 = vmatmul.mubr.bf16.gmra.mxu0 %v1174_v34  ;;  %1130 = vmatmul.mubr.bf16.gmra.mxu1 %v1190_v35 }
  0x53   :  { %1101 = vmatprep.mubr.bf16.mxu0 %v1175_v36  ;;  %1133 = vmatprep.mubr.bf16.mxu1 %v1191_v37 }
  0x5a   :  { %1102 = vmatmul.mubr.bf16.gmra.mxu0 %v1176_v38  ;;  %1134 = vmatmul.mubr.bf16.gmra.mxu1 %v1192_v39 }
  0xe2   :  { %v1075_v41 = vpop.f32.mrf.mxu0  ;;  %v1107_v42 = vpop.f32.mrf.mxu1 }
  0xe3   :  { %v387_v43 = vadd.f32 %v1075_v41, %v1341_v40  ;;  %v515_v44 = vadd.f32 %v1107_v42, %v1341_v40 }
  0xe4   :  { %v378_v45 = vpop.f32.mrf.mxu0  ;;  %v506_v46 = vpop.f32.mrf.mxu1 }
  0xe5   :  { %v635_v47 = vmax.f32 %v387_v43, 0.0  ;;  %v379_v48 = vadd.f32 %v1341_v40, %v378_v45  ;;  %v1346_v49 = vmax.f32 %v515_v44, 0.0  ;;  %v507_v50 = vadd.f32 %v1341_v40, %v506_v46 }
  0xe6   :  { %v1076_v51 = vpop.f32.mrf.mxu0  ;;  %v1108_v52 = vpop.f32.mrf.mxu1 }
  0xe7   :  { %699 = vst [vmem:[%s1797_s3 + $0x10] sm:$0xff] %v635_v47  ;;  %v633_v53 = vmax.f32 %v379_v48, 0.0  ;;  %v390_v54 = vadd.f32 %v1076_v51, %v1341_v40  ;;  %731 = vst [vmem:[%s1797_s3 + $0x110] sm:$0xff] %v1346_v49  ;;  %v1357_v56 = vmax.f32 %v507_v50, 0.0  ;;  %v518_v57 = vadd.f32 %v1108_v52, %v1341_v40 }
  0xe8   :  { %v381_v55 = vpop.f32.mrf.mxu0  ;;  %v509_v58 = vpop.f32.mrf.mxu1  ;;  %v832_v16 = vmul.f32 %v635_v47, %v635_v47 }
  0xe9   :  { %697 = vst [vmem:[%s1797_s3] sm:$0xff] %v633_v53  ;;  %v636_v59 = vmax.f32 %v390_v54, 0.0  ;;  %v382_v60 = vadd.f32 %v1341_v40, %v381_v55  ;;  %v510_v61 = vadd.f32 %v1341_v40, %v509_v58  ;;  %729 = vst [vmem:[%s1797_s3 + $0x100] sm:$0xff] %v1357_v56  ;;  %v1369_v63 = vmax.f32 %v518_v57, 0.0 }
  0xea   :  { %v1079_v62 = vpop.f32.mrf.mxu0  ;;  %v1111_v0 = vpop.f32.mrf.mxu1  ;;  %v830_v4 = vmul.f32 %v633_v53, %v633_v53 }
  0xeb   :  { %700 = vst [vmem:[%s1797_s3 + $0x18] sm:$0xff] %v636_v59  ;;  %v634_v1 = vmax.f32 %v382_v60, 0.0  ;;  %v403_v2 = vadd.f32 %v1079_v62, %v1341_v40  ;;  %v1375_v3 = vmax.f32 %v510_v61, 0.0  ;;  %732 = vst [vmem:[%s1797_s3 + $0x118] sm:$0xff] %v1369_v63  ;;  %v531_v6 = vadd.f32 %v1111_v0, %v1341_v40 }
  0xec   :  { %v394_v5 = vpop.f32.mrf.mxu0  ;;  %v522_v7 = vpop.f32.mrf.mxu1  ;;  %v833_v25 = vmul.f32 %v636_v59, %v636_v59 }
  0xed   :  { %698 = vst [vmem:[%s1797_s3 + $0x8] sm:$0xff] %v634_v1  ;;  %v761_v8 = vadd.f32 %v634_v1, %v633_v53  ;;  %v831_v9 = vmul.f32 %v634_v1, %v634_v1  ;;  %v639_v10 = vmax.f32 %v403_v2, 0.0  ;;  %v395_v11 = vadd.f32 %v1341_v40, %v394_v5  ;;  %730 = vst [vmem:[%s1797_s3 + $0x108] sm:$0xff] %v1375_v3 }
  0xee   :  { %v1080_v12 = vpop.f32.mrf.mxu0  ;;  %v1390_v13 = vmax.f32 %v531_v6, 0.0  ;;  %v523_v14 = vadd.f32 %v1341_v40, %v522_v7  ;;  %v1112_v15 = vpop.f32.mrf.mxu1 }
  0xef   :  { %v762_v17 = vadd.f32 %v761_v8, %v635_v47  ;;  %v894_v18 = vadd.f32 %v831_v9, %v830_v4  ;;  %703 = vst [vmem:[%s1797_s3 + $0x30] sm:$0xff] %v639_v10  ;;  %v637_v19 = vmax.f32 %v395_v11, 0.0  ;;  %v406_v20 = vadd.f32 %v1080_v12, %v1341_v40 }
  0xf0   :  { %v397_v21 = vpop.f32.mrf.mxu0  ;;  %735 = vst [vmem:[%s1797_s3 + $0x130] sm:$0xff] %v1390_v13  ;;  %v1401_v22 = vmax.f32 %v523_v14, 0.0  ;;  %v534_v23 = vadd.f32 %v1112_v15, %v1341_v40  ;;  %v525_v24 = vpop.f32.mrf.mxu1  ;;  %v836_v54 = vmul.f32 %v639_v10, %v639_v10 }
  0xf1   :  { %v895_v26 = vadd.f32 %v894_v18, %v832_v16  ;;  %701 = vst [vmem:[%s1797_s3 + $0x20] sm:$0xff] %v637_v19  ;;  %v763_v27 = vadd.f32 %v762_v17, %v636_v59  ;;  %v398_v28 = vadd.f32 %v1341_v40, %v397_v21  ;;  %v834_v29 = vmul.f32 %v637_v19, %v637_v19 }
  0xf2   :  { %v640_v30 = vmax.f32 %v406_v20, 0.0  ;;  %v1083_v31 = vpop.f32.mrf.mxu0  ;;  %733 = vst [vmem:[%s1797_s3 + $0x120] sm:$0xff] %v1401_v22  ;;  %v1412_v32 = vmax.f32 %v534_v23, 0.0  ;;  %v526_v33 = vadd.f32 %v1341_v40, %v525_v24  ;;  %v1115_v34 = vpop.f32.mrf.mxu1 }
  0xf3   :  { %v764_v35 = vadd.f32 %v763_v27, %v637_v19  ;;  %v896_v36 = vadd.f32 %v895_v26, %v833_v25  ;;  %v638_v37 = vmax.f32 %v398_v28, 0.0  ;;  %v419_v38 = vadd.f32 %v1083_v31, %v1341_v40 }
  0xf4   :  { %704 = vst [vmem:[%s1797_s3 + $0x38] sm:$0xff] %v640_v30  ;;  %v410_v39 = vpop.f32.mrf.mxu0  ;;  %736 = vst [vmem:[%s1797_s3 + $0x138] sm:$0xff] %v1412_v32  ;;  %v1423_v41 = vmax.f32 %v526_v33, 0.0  ;;  %v547_v42 = vadd.f32 %v1115_v34, %v1341_v40  ;;  %v538_v43 = vpop.f32.mrf.mxu1  ;;  %v837_v59 = vmul.f32 %v640_v30, %v640_v30 }
  0xf5   :  { %v897_v44 = vadd.f32 %v896_v36, %v834_v29  ;;  %702 = vst [vmem:[%s1797_s3 + $0x28] sm:$0xff] %v638_v37  ;;  %v765_v45 = vadd.f32 %v764_v35, %v638_v37  ;;  %v835_v46 = vmul.f32 %v638_v37, %v638_v37  ;;  %v643_v47 = vmax.f32 %v419_v38, 0.0 }
  0xf6   :  { %v411_v48 = vadd.f32 %v1341_v40, %v410_v39  ;;  %v1084_v50 = vpop.f32.mrf.mxu0  ;;  %734 = vst [vmem:[%s1797_s3 + $0x128] sm:$0xff] %v1423_v41  ;;  %v1434_v51 = vmax.f32 %v547_v42, 0.0  ;;  %v539_v52 = vadd.f32 %v1341_v40, %v538_v43  ;;  %v1116_v53 = vpop.f32.mrf.mxu1 }
  0xf7   :  { %v766_v55 = vadd.f32 %v765_v45, %v639_v10  ;;  %v898_v57 = vadd.f32 %v897_v44, %v835_v46  ;;  %707 = vst [vmem:[%s1797_s3 + $0x50] sm:$0xff] %v643_v47  ;;  %v422_v58 = vadd.f32 %v1084_v50, %v1341_v40  ;;  %v550_v0 = vadd.f32 %v1116_v53, %v1341_v40 }
  0xf8   :  { %v641_v60 = vmax.f32 %v411_v48, 0.0  ;;  %v413_v61 = vpop.f32.mrf.mxu0  ;;  %739 = vst [vmem:[%s1797_s3 + $0x150] sm:$0xff] %v1434_v51  ;;  %v1445_v62 = vmax.f32 %v539_v52, 0.0  ;;  %v541_v1 = vpop.f32.mrf.mxu1  ;;  %v840_v26 = vmul.f32 %v643_v47, %v643_v47 }
  0xf9   :  { %v899_v2 = vadd.f32 %v898_v57, %v836_v54  ;;  %v767_v4 = vadd.f32 %v766_v55, %v640_v30  ;;  %v644_v5 = vmax.f32 %v422_v58, 0.0  ;;  %v414_v6 = vadd.f32 %v1341_v40, %v413_v61 }
  0xfa   :  { %705 = vst [vmem:[%s1797_s3 + $0x40] sm:$0xff] %v641_v60  ;;  %v1087_v7 = vpop.f32.mrf.mxu0  ;;  %737 = vst [vmem:[%s1797_s3 + $0x140] sm:$0xff] %v1445_v62  ;;  %v1456_v8 = vmax.f32 %v550_v0, 0.0  ;;  %v542_v9 = vadd.f32 %v1341_v40, %v541_v1  ;;  %v1119_v10 = vpop.f32.mrf.mxu1  ;;  %v838_v12 = vmul.f32 %v641_v60, %v641_v60 }
  0xfb   :  { %v768_v11 = vadd.f32 %v767_v4, %v641_v60  ;;  %v900_v14 = vadd.f32 %v899_v2, %v837_v59  ;;  %708 = vst [vmem:[%s1797_s3 + $0x58] sm:$0xff] %v644_v5  ;;  %v642_v15 = vmax.f32 %v414_v6, 0.0  ;;  %v435_v16 = vadd.f32 %v1087_v7, %v1341_v40 }
  0xfc   :  { %v426_v17 = vpop.f32.mrf.mxu0  ;;  %740 = vst [vmem:[%s1797_s3 + $0x158] sm:$0xff] %v1456_v8  ;;  %v1467_v18 = vmax.f32 %v542_v9, 0.0  ;;  %v563_v19 = vadd.f32 %v1119_v10, %v1341_v40  ;;  %v554_v20 = vpop.f32.mrf.mxu1  ;;  %v841_v43 = vmul.f32 %v644_v5, %v644_v5 }
  0xfd   :  { %v901_v21 = vadd.f32 %v900_v14, %v838_v12  ;;  %706 = vst [vmem:[%s1797_s3 + $0x48] sm:$0xff] %v642_v15  ;;  %v769_v23 = vadd.f32 %v768_v11, %v642_v15  ;;  %v839_v24 = vmul.f32 %v642_v15, %v642_v15  ;;  %v427_v25 = vadd.f32 %v1341_v40, %v426_v17 }
  0xfe   :  { %v647_v27 = vmax.f32 %v435_v16, 0.0  ;;  %v1088_v28 = vpop.f32.mrf.mxu0  ;;  %738 = vst [vmem:[%s1797_s3 + $0x148] sm:$0xff] %v1467_v18  ;;  %v1478_v29 = vmax.f32 %v563_v19, 0.0  ;;  %v555_v30 = vadd.f32 %v1341_v40, %v554_v20  ;;  %v1120_v31 = vpop.f32.mrf.mxu1 }
  0xff   :  { %v770_v33 = vadd.f32 %v769_v23, %v643_v47  ;;  %v902_v34 = vadd.f32 %v901_v21, %v839_v24  ;;  %v645_v35 = vmax.f32 %v427_v25, 0.0  ;;  %v438_v36 = vadd.f32 %v1088_v28, %v1341_v40 }
 0x100   :  { %711 = vst [vmem:[%s1797_s3 + $0x70] sm:$0xff] %v647_v27  ;;  %v429_v37 = vpop.f32.mrf.mxu0  ;;  %743 = vst [vmem:[%s1797_s3 + $0x170] sm:$0xff] %v1478_v29  ;;  %v1489_v38 = vmax.f32 %v555_v30, 0.0  ;;  %v566_v39 = vadd.f32 %v1120_v31, %v1341_v40  ;;  %v557_v42 = vpop.f32.mrf.mxu1  ;;  %v844_v17 = vmul.f32 %v647_v27, %v647_v27 }
 0x101   :  { %v903_v44 = vadd.f32 %v902_v34, %v840_v26  ;;  %709 = vst [vmem:[%s1797_s3 + $0x60] sm:$0xff] %v645_v35  ;;  %v771_v45 = vadd.f32 %v770_v33, %v644_v5  ;;  %v648_v46 = vmax.f32 %v438_v36, 0.0  ;;  %v430_v47 = vadd.f32 %v1341_v40, %v429_v37 }
 0x102   :  { %v1091_v48 = vpop.f32.mrf.mxu0  ;;  %741 = vst [vmem:[%s1797_s3 + $0x160] sm:$0xff] %v1489_v38  ;;  %v1500_v50 = vmax.f32 %v566_v39, 0.0  ;;  %v558_v52 = vadd.f32 %v1341_v40, %v557_v42  ;;  %v1123_v53 = vpop.f32.mrf.mxu1  ;;  %v842_v55 = vmul.f32 %v645_v35, %v645_v35 }
 0x103   :  { %v772_v54 = vadd.f32 %v771_v45, %v645_v35  ;;  %v904_v57 = vadd.f32 %v903_v44, %v841_v43  ;;  %712 = vst [vmem:[%s1797_s3 + $0x78] sm:$0xff] %v648_v46  ;;  %v451_v58 = vadd.f32 %v1091_v48, %v1341_v40  ;;  %v646_v59 = vmax.f32 %v430_v47, 0.0 }
 0x104   :  { %v442_v60 = vpop.f32.mrf.mxu0  ;;  %744 = vst [vmem:[%s1797_s3 + $0x178] sm:$0xff] %v1500_v50  ;;  %v1511_v61 = vmax.f32 %v558_v52, 0.0  ;;  %v579_v0 = vadd.f32 %v1123_v53, %v1341_v40  ;;  %v570_v1 = vpop.f32.mrf.mxu1  ;;  %v845_v25 = vmul.f32 %v648_v46, %v648_v46 }
 0x105   :  { %v905_v2 = vadd.f32 %v904_v57, %v842_v55  ;;  %v651_v4 = vmax.f32 %v451_v58, 0.0  ;;  %v443_v5 = vadd.f32 %v1341_v40, %v442_v60  ;;  %v571_v6 = vadd.f32 %v1341_v40, %v570_v1  ;;  %710 = vst [vmem:[%s1797_s3 + $0x68] sm:$0xff] %v646_v59 }
 0x106   :  { %v773_v7 = vadd.f32 %v772_v54, %v646_v59  ;;  %v843_v9 = vmul.f32 %v646_v59, %v646_v59  ;;  %v1092_v10 = vpop.f32.mrf.mxu0  ;;  %742 = vst [vmem:[%s1797_s3 + $0x168] sm:$0xff] %v1511_v61  ;;  %v1523_v11 = vmax.f32 %v579_v0, 0.0  ;;  %v1124_v12 = vpop.f32.mrf.mxu1 }
 0x107   :  { %715 = vst [vmem:[%s1797_s3 + $0x90] sm:$0xff] %v651_v4  ;;  %v649_v14 = vmax.f32 %v443_v5, 0.0  ;;  %v454_v15 = vadd.f32 %v1092_v10, %v1341_v40  ;;  %v1529_v16 = vmax.f32 %v571_v6, 0.0  ;;  %v582_v23 = vadd.f32 %v1124_v12, %v1341_v40 }
 0x108   :  { %v774_v19 = vadd.f32 %v773_v7, %v647_v27  ;;  %v906_v20 = vadd.f32 %v905_v2, %v843_v9  ;;  %v445_v21 = vpop.f32.mrf.mxu0  ;;  %747 = vst [vmem:[%s1797_s3 + $0x190] sm:$0xff] %v1523_v11  ;;  %v573_v24 = vpop.f32.mrf.mxu1  ;;  %v848_v0 = vmul.f32 %v651_v4, %v651_v4 }
 0x109   :  { %713 = vst [vmem:[%s1797_s3 + $0x80] sm:$0xff] %v649_v14  ;;  %v652_v26 = vmax.f32 %v454_v15, 0.0  ;;  %v446_v28 = vadd.f32 %v1341_v40, %v445_v21  ;;  %745 = vst [vmem:[%s1797_s3 + $0x180] sm:$0xff] %v1529_v16  ;;  %v1544_v33 = vmax.f32 %v582_v23, 0.0  ;;  %v574_v34 = vadd.f32 %v1341_v40, %v573_v24 }
 0x10a   :  { %v907_v27 = vadd.f32 %v906_v20, %v844_v17  ;;  %v775_v30 = vadd.f32 %v774_v19, %v648_v46  ;;  %v1095_v31 = vpop.f32.mrf.mxu0  ;;  %v1127_v35 = vpop.f32.mrf.mxu1  ;;  %v846_v43 = vmul.f32 %v649_v14, %v649_v14 }
 0x10b   :  { %716 = vst [vmem:[%s1797_s3 + $0x98] sm:$0xff] %v652_v26  ;;  %v650_v36 = vmax.f32 %v446_v28, 0.0  ;;  %v467_v37 = vadd.f32 %v1095_v31, %v1341_v40  ;;  %v595_v39 = vadd.f32 %v1127_v35, %v1341_v40  ;;  %748 = vst [vmem:[%s1797_s3 + $0x198] sm:$0xff] %v1544_v33  ;;  %v1556_v46 = vmax.f32 %v574_v34, 0.0 }
 0x10c   :  { %v776_v42 = vadd.f32 %v775_v30, %v649_v14  ;;  %v908_v44 = vadd.f32 %v907_v27, %v845_v25  ;;  %v458_v45 = vpop.f32.mrf.mxu0  ;;  %v586_v47 = vpop.f32.mrf.mxu1  ;;  %v849_v19 = vmul.f32 %v652_v26, %v652_v26 }
 0x10d   :  { %714 = vst [vmem:[%s1797_s3 + $0x88] sm:$0xff] %v650_v36  ;;  %v847_v48 = vmul.f32 %v650_v36, %v650_v36  ;;  %v655_v52 = vmax.f32 %v467_v37, 0.0  ;;  %v459_v53 = vadd.f32 %v1341_v40, %v458_v45  ;;  %v1562_v54 = vmax.f32 %v595_v39, 0.0  ;;  %746 = vst [vmem:[%s1797_s3 + $0x188] sm:$0xff] %v1556_v46 }
 0x10e   :  { %v909_v55 = vadd.f32 %v908_v44, %v846_v43  ;;  %v777_v57 = vadd.f32 %v776_v42, %v650_v36  ;;  %v1096_v58 = vpop.f32.mrf.mxu0  ;;  %v587_v59 = vadd.f32 %v1341_v40, %v586_v47  ;;  %v1128_v60 = vpop.f32.mrf.mxu1 }
 0x10f   :  { %719 = vst [vmem:[%s1797_s3 + $0xb0] sm:$0xff] %v655_v52  ;;  %v653_v1 = vmax.f32 %v459_v53, 0.0  ;;  %v470_v2 = vadd.f32 %v1096_v58, %v1341_v40  ;;  %751 = vst [vmem:[%s1797_s3 + $0x1b0] sm:$0xff] %v1562_v54  ;;  %v598_v10 = vadd.f32 %v1128_v60, %v1341_v40 }
 0x110   :  { %v778_v5 = vadd.f32 %v777_v57, %v651_v4  ;;  %v910_v6 = vadd.f32 %v909_v55, %v847_v48  ;;  %v461_v7 = vpop.f32.mrf.mxu0  ;;  %v1577_v9 = vmax.f32 %v587_v59, 0.0  ;;  %v589_v12 = vpop.f32.mrf.mxu1  ;;  %v852_v59 = vmul.f32 %v655_v52, %v655_v52 }
 0x111   :  { %717 = vst [vmem:[%s1797_s3 + $0xa0] sm:$0xff] %v653_v1  ;;  %v656_v14 = vmax.f32 %v470_v2, 0.0  ;;  %v462_v15 = vadd.f32 %v1341_v40, %v461_v7  ;;  %v590_v17 = vadd.f32 %v1341_v40, %v589_v12  ;;  %v1589_v23 = vmax.f32 %v598_v10, 0.0 }
 0x112   :  { %v911_v20 = vadd.f32 %v910_v6, %v848_v0  ;;  %v779_v21 = vadd.f32 %v778_v5, %v652_v26  ;;  %v1099_v4 = vpop.f32.mrf.mxu0  ;;  %749 = vst [vmem:[%s1797_s3 + $0x1a0] sm:$0xff] %v1577_v9  ;;  %v1131_v24 = vpop.f32.mrf.mxu1  ;;  %v850_v26 = vmul.f32 %v653_v1, %v653_v1 }
 0x113   :  { %720 = vst [vmem:[%s1797_s3 + $0xb8] sm:$0xff] %v656_v14  ;;  %v654_v25 = vmax.f32 %v462_v15, 0.0  ;;  %v483_v28 = vadd.f32 %v1099_v4, %v1341_v40  ;;  %v1595_v27 = vmax.f32 %v590_v17, 0.0  ;;  %752 = vst [vmem:[%s1797_s3 + $0x1b8] sm:$0xff] %v1589_v23  ;;  %v611_v35 = vadd.f32 %v1131_v24, %v1341_v40 }
 0x114   :  { %v780_v30 = vadd.f32 %v779_v21, %v653_v1  ;;  %v912_v31 = vadd.f32 %v911_v20, %v849_v19  ;;  %v474_v34 = vpop.f32.mrf.mxu0  ;;  %v602_v36 = vpop.f32.mrf.mxu1 }
 0x115   :  { %718 = vst [vmem:[%s1797_s3 + $0xa8] sm:$0xff] %v654_v25  ;;  %v851_v37 = vmul.f32 %v654_v25, %v654_v25  ;;  %v659_v39 = vmax.f32 %v483_v28, 0.0  ;;  %v475_v42 = vadd.f32 %v1341_v40, %v474_v34  ;;  %750 = vst [vmem:[%s1797_s3 + $0x1a8] sm:$0xff] %v1595_v27  ;;  %v1610_v47 = vmax.f32 %v611_v35, 0.0 }
 0x116   :  { %v913_v43 = vadd.f32 %v912_v31, %v850_v26  ;;  %v781_v44 = vadd.f32 %v780_v30, %v654_v25  ;;  %v1100_v45 = vpop.f32.mrf.mxu0  ;;  %v603_v48 = vadd.f32 %v1341_v40, %v602_v36  ;;  %v1132_v53 = vpop.f32.mrf.mxu1 }
 0x117   :  { %723 = vst [vmem:[%s1797_s3 + $0xd0] sm:$0xff] %v659_v39  ;;  %v657_v55 = vmax.f32 %v475_v42, 0.0  ;;  %v486_v57 = vadd.f32 %v1100_v45, %v1341_v40  ;;  %v614_v58 = vadd.f32 %v1132_v53, %v1341_v40  ;;  %755 = vst [vmem:[%s1797_s3 + $0x1d0] sm:$0xff] %v1610_v47 }
 0x118   :  { %v782_v60 = vadd.f32 %v781_v44, %v655_v52  ;;  %v914_v0 = vadd.f32 %v913_v43, %v851_v37  ;;  %v477_v1 = vpop.f32.mrf.mxu0  ;;  %v1622_v2 = vmax.f32 %v603_v48, 0.0  ;;  %v605_v5 = vpop.f32.mrf.mxu1  ;;  %v853_v52 = vmul.f32 %v656_v14, %v656_v14 }
 0x119   :  { %721 = vst [vmem:[%s1797_s3 + $0xc0] sm:$0xff] %v657_v55  ;;  %v660_v6 = vmax.f32 %v486_v57, 0.0  ;;  %v478_v7 = vadd.f32 %v1341_v40, %v477_v1  ;;  %v1628_v10 = vmax.f32 %v614_v58, 0.0  ;;  %v606_v19 = vadd.f32 %v1341_v40, %v605_v5 }
 0x11a   :  { %v915_v12 = vadd.f32 %v914_v0, %v852_v59  ;;  %v783_v15 = vadd.f32 %v782_v60, %v656_v14  ;;  %v1103_v17 = vpop.f32.mrf.mxu0  ;;  %753 = vst [vmem:[%s1797_s3 + $0x1c0] sm:$0xff] %v1622_v2  ;;  %v1135_v20 = vpop.f32.mrf.mxu1  ;;  %v854_v21 = vmul.f32 %v657_v55, %v657_v55  ;;  %v856_v58 = vmul.f32 %v659_v39, %v659_v39 }
 0x11b   :  { %724 = vst [vmem:[%s1797_s3 + $0xd8] sm:$0xff] %v660_v6  ;;  %v658_v4 = vmax.f32 %v478_v7, 0.0  ;;  %v499_v24 = vadd.f32 %v1103_v17, %v1341_v40  ;;  %756 = vst [vmem:[%s1797_s3 + $0x1d8] sm:$0xff] %v1628_v10  ;;  %v1643_v30 = vmax.f32 %v606_v19, 0.0  ;;  %v627_v26 = vadd.f32 %v1135_v20, %v1341_v40 }
 0x11c   :  { %v784_v14 = vadd.f32 %v783_v15, %v657_v55  ;;  %v916_v25 = vadd.f32 %v915_v12, %v853_v52  ;;  %v490_v28 = vpop.f32.mrf.mxu0  ;;  %v618_v31 = vpop.f32.mrf.mxu1  ;;  %v857_v7 = vmul.f32 %v660_v6, %v660_v6 }
 0x11d   :  { %722 = vst [vmem:[%s1797_s3 + $0xc8] sm:$0xff] %v658_v4  ;;  %v855_v34 = vmul.f32 %v658_v4, %v658_v4  ;;  %v663_v35 = vmax.f32 %v499_v24, 0.0  ;;  %v491_v36 = vadd.f32 %v1341_v40, %v490_v28  ;;  %v619_v37 = vadd.f32 %v1341_v40, %v618_v31  ;;  %754 = vst [vmem:[%s1797_s3 + $0x1c8] sm:$0xff] %v1643_v30 }
 0x11e   :  { %v917_v42 = vadd.f32 %v916_v25, %v854_v21  ;;  %v785_v43 = vadd.f32 %v784_v14, %v658_v4  ;;  %v1104_v44 = vpop.f32.mrf.mxu0  ;;  %v1655_v45 = vmax.f32 %v627_v26, 0.0  ;;  %v1136_v48 = vpop.f32.mrf.mxu1 }
 0x11f   :  { %727 = vst [vmem:[%s1797_s3 + $0xf0] sm:$0xff] %v663_v35  ;;  %v661_v53 = vmax.f32 %v491_v36, 0.0  ;;  %v502_v55 = vadd.f32 %v1104_v44, %v1341_v40  ;;  %v1661_v57 = vmax.f32 %v619_v37, 0.0  ;;  %v630_v1 = vadd.f32 %v1136_v48, %v1341_v40 }
 0x120   :  { %v786_v59 = vadd.f32 %v785_v43, %v659_v39  ;;  %v918_v60 = vadd.f32 %v917_v42, %v855_v34  ;;  %v493_v0 = vpop.f32.mrf.mxu0  ;;  %759 = vst [vmem:[%s1797_s3 + $0x1f0] sm:$0xff] %v1655_v45  ;;  %v621_v5 = vpop.f32.mrf.mxu1  ;;  %v860_v28 = vmul.f32 %v663_v35, %v663_v35  ;;  %v862_v42 = vmul.f32 %v1357_v56, %v1357_v56 }
 0x121   :  { %725 = vst [vmem:[%s1797_s3 + $0xe0] sm:$0xff] %v661_v53  ;;  %v664_v52 = vmax.f32 %v502_v55, 0.0  ;;  %v494_v12 = vadd.f32 %v1341_v40, %v493_v0  ;;  %757 = vst [vmem:[%s1797_s3 + $0x1e0] sm:$0xff] %v1661_v57  ;;  %v1676_v17 = vmax.f32 %v630_v1, 0.0  ;;  %v622_v19 = vadd.f32 %v1341_v40, %v621_v5 }
 0x122   :  { %v919_v39 = vadd.f32 %v918_v60, %v856_v58  ;;  %v787_v15 = vadd.f32 %v786_v59, %v660_v6  ;;  %v858_v4 = vmul.f32 %v661_v53, %v661_v53  ;;  %v864_v58 = vmul.f32 %v1346_v49, %v1346_v49 }
 0x123   :  { %728 = vst [vmem:[%s1797_s3 + $0xf8] sm:$0xff] %v664_v52  ;;  %v662_v20 = vmax.f32 %v494_v12, 0.0  ;;  %760 = vst [vmem:[%s1797_s3 + $0x1f8] sm:$0xff] %v1676_v17  ;;  %v1686_v14 = vmax.f32 %v622_v19, 0.0  ;;  %v861_v34 = vmul.f32 %v664_v52, %v664_v52  ;;  %v865_v60 = vmul.f32 %v1369_v63, %v1369_v63 }
 0x124   :  { %v788_v21 = vadd.f32 %v787_v15, %v661_v53  ;;  %v920_v24 = vadd.f32 %v919_v39, %v857_v7  ;;  %v863_v53 = vmul.f32 %v1375_v3, %v1375_v3  ;;  %v866_v5 = vmul.f32 %v1401_v22, %v1401_v22 }
 0x125   :  { %726 = vst [vmem:[%s1797_s3 + $0xe8] sm:$0xff] %v662_v20  ;;  %v859_v40 = vmul.f32 %v662_v20, %v662_v20  ;;  %758 = vst [vmem:[%s1797_s3 + $0x1e8] sm:$0xff] %v1686_v14  ;;  %v867_v12 = vmul.f32 %v1423_v41, %v1423_v41 }
 0x126   :  { %v921_v6 = vadd.f32 %v920_v24, %v858_v4  ;;  %v789_v25 = vadd.f32 %v788_v21, %v662_v20  ;;  %v870_v21 = vmul.f32 %v1445_v62, %v1445_v62 }
 0x128   :  { %v790_v26 = vadd.f32 %v789_v25, %v663_v35  ;;  %v922_v31 = vadd.f32 %v921_v6, %v859_v40  ;;  %v871_v40 = vmul.f32 %v1467_v18, %v1467_v18 }
 0x12a   :  { %v923_v36 = vadd.f32 %v922_v31, %v860_v28  ;;  %v791_v37 = vadd.f32 %v790_v26, %v664_v52  ;;  %v874_v31 = vmul.f32 %v1489_v38, %v1489_v38 }
 0x12c   :  { %v792_v43 = vadd.f32 %v791_v37, %v1357_v56  ;;  %v924_v44 = vadd.f32 %v923_v36, %v861_v34  ;;  %v875_v37 = vmul.f32 %v1511_v61, %v1511_v61 }
 0x12e   :  { %v793_v48 = vadd.f32 %v792_v43, %v1375_v3  ;;  %v925_v55 = vadd.f32 %v924_v44, %v862_v42 }
 0x130   :  { %v794_v35 = vadd.f32 %v793_v48, %v1346_v49  ;;  %v926_v59 = vadd.f32 %v925_v55, %v863_v53  ;;  %v868_v49 = vmul.f32 %v1390_v13, %v1390_v13  ;;  %v878_v53 = vmul.f32 %v1529_v16, %v1529_v16 }
 0x132   :  { %v927_v0 = vadd.f32 %v926_v59, %v864_v58  ;;  %v795_v1 = vadd.f32 %v794_v35, %v1369_v63  ;;  %v869_v63 = vmul.f32 %v1412_v32, %v1412_v32  ;;  %v879_v35 = vmul.f32 %v1556_v46, %v1556_v46 }
 0x134   :  { %v796_v56 = vadd.f32 %v795_v1, %v1401_v22  ;;  %v928_v7 = vadd.f32 %v927_v0, %v865_v60 }
 0x136   :  { %v929_v3 = vadd.f32 %v928_v7, %v866_v5  ;;  %v797_v52 = vadd.f32 %v796_v56, %v1423_v41  ;;  %v882_v56 = vmul.f32 %v1577_v9, %v1577_v9 }
 0x138   :  { %v798_v39 = vadd.f32 %v797_v52, %v1390_v13  ;;  %v930_v15 = vadd.f32 %v929_v3, %v867_v12  ;;  %v872_v13 = vmul.f32 %v1434_v51, %v1434_v51  ;;  %v883_v3 = vmul.f32 %v1595_v27, %v1595_v27 }
 0x13a   :  { %v931_v19 = vadd.f32 %v930_v15, %v868_v49  ;;  %v799_v20 = vadd.f32 %v798_v39, %v1412_v32  ;;  %v873_v32 = vmul.f32 %v1456_v8, %v1456_v8  ;;  %v886_v15 = vmul.f32 %v1622_v2, %v1622_v2 }
 0x13c   :  { %v800_v22 = vadd.f32 %v799_v20, %v1445_v62  ;;  %v932_v4 = vadd.f32 %v931_v19, %v869_v63  ;;  %v887_v20 = vmul.f32 %v1643_v30, %v1643_v30 }
 0x13e   :  { %v933_v24 = vadd.f32 %v932_v4, %v870_v21  ;;  %v801_v41 = vadd.f32 %v800_v22, %v1467_v18 }
 0x140   :  { %v802_v6 = vadd.f32 %v801_v41, %v1434_v51  ;;  %v934_v25 = vadd.f32 %v933_v24, %v871_v40  ;;  %v876_v51 = vmul.f32 %v1478_v29, %v1478_v29  ;;  %v890_v41 = vmul.f32 %v1661_v57, %v1661_v57 }
 0x142   :  { %v935_v28 = vadd.f32 %v934_v25, %v872_v13  ;;  %v803_v26 = vadd.f32 %v802_v6, %v1456_v8  ;;  %v877_v8 = vmul.f32 %v1500_v50, %v1500_v50  ;;  %v891_v6 = vmul.f32 %v1686_v14, %v1686_v14 }
 0x144   :  { %v804_v62 = vadd.f32 %v803_v26, %v1489_v38  ;;  %v936_v34 = vadd.f32 %v935_v28, %v873_v32 }
 0x146   :  { %v937_v36 = vadd.f32 %v936_v34, %v874_v31  ;;  %v805_v18 = vadd.f32 %v804_v62, %v1511_v61 }
 0x148   :  { %v806_v42 = vadd.f32 %v805_v18, %v1478_v29  ;;  %v938_v43 = vadd.f32 %v937_v36, %v875_v37  ;;  %v880_v29 = vmul.f32 %v1523_v11, %v1523_v11 }
 0x14a   :  { %v939_v44 = vadd.f32 %v938_v43, %v876_v51  ;;  %v807_v48 = vadd.f32 %v806_v42, %v1500_v50  ;;  %v881_v50 = vmul.f32 %v1544_v33, %v1544_v33 }
 0x14c   :  { %v808_v38 = vadd.f32 %v807_v48, %v1529_v16  ;;  %v940_v55 = vadd.f32 %v939_v44, %v877_v8 }
 0x14e   :  { %v941_v58 = vadd.f32 %v940_v55, %v878_v53  ;;  %v809_v61 = vadd.f32 %v808_v38, %v1556_v46 }
 0x150   :  { %v810_v59 = vadd.f32 %v809_v61, %v1523_v11  ;;  %v942_v60 = vadd.f32 %v941_v58, %v879_v35  ;;  %v884_v11 = vmul.f32 %v1562_v54, %v1562_v54 }
 0x152   :  { %v943_v0 = vadd.f32 %v942_v60, %v880_v29  ;;  %v811_v1 = vadd.f32 %v810_v59, %v1544_v33  ;;  %v885_v33 = vmul.f32 %v1589_v23, %v1589_v23 }
 0x154   :  { %v812_v16 = vadd.f32 %v811_v1, %v1577_v9  ;;  %v944_v5 = vadd.f32 %v943_v0, %v881_v50 }
 0x156   :  { %v945_v7 = vadd.f32 %v944_v5, %v882_v56  ;;  %v813_v46 = vadd.f32 %v812_v16, %v1595_v27 }
 0x158   :  { %v814_v52 = vadd.f32 %v813_v46, %v1562_v54  ;;  %v946_v12 = vadd.f32 %v945_v7, %v883_v3  ;;  %v888_v54 = vmul.f32 %v1610_v47, %v1610_v47 }
 0x15a   :  { %v947_v49 = vadd.f32 %v946_v12, %v884_v11  ;;  %v815_v39 = vadd.f32 %v814_v52, %v1589_v23  ;;  %v889_v23 = vmul.f32 %v1628_v10, %v1628_v10 }
 0x15c   :  { %v816_v9 = vadd.f32 %v815_v39, %v1622_v2  ;;  %v948_v63 = vadd.f32 %v947_v49, %v885_v33 }
 0x15e   :  { %v949_v19 = vadd.f32 %v948_v63, %v886_v15  ;;  %v817_v27 = vadd.f32 %v816_v9, %v1643_v30 }
 0x160   :  { %v818_v22 = vadd.f32 %v817_v27, %v1610_v47  ;;  %v950_v21 = vadd.f32 %v949_v19, %v887_v20  ;;  %v892_v47 = vmul.f32 %v1655_v45, %v1655_v45 }
 0x162   :  { %v951_v4 = vadd.f32 %v950_v21, %v888_v54  ;;  %v819_v24 = vadd.f32 %v818_v22, %v1628_v10  ;;  %v893_v10 = vmul.f32 %v1676_v17, %v1676_v17 }
 0x164   :  { %v820_v2 = vadd.f32 %v819_v24, %v1661_v57  ;;  %v952_v40 = vadd.f32 %v951_v4, %v889_v23 }
 0x166   :  { %v953_v13 = vadd.f32 %v952_v40, %v890_v41  ;;  %v821_v30 = vadd.f32 %v820_v2, %v1686_v14 }
 0x168   :  { %v822_v25 = vadd.f32 %v821_v30, %v1655_v45  ;;  %v954_v32 = vadd.f32 %v953_v13, %v891_v6 }
 0x16a   :  { %v823_v28 = vadd.f32 %v822_v25, %v1676_v17  ;;  %v955_v26 = vadd.f32 %v954_v32, %v892_v47 }
 0x16c   :  { %v824_v57 = vrot.slane %v823_v28, 4  ;;  %v956_v62 = vadd.f32 %v955_v26, %v893_v10 }
 0x16e   :  { %v825_v31 = vadd.f32 %v824_v57, %v823_v28  ;;  %v957_v34 = vrot.slane %v956_v62, 4 }
 0x170   :  { %v826_v36 = vrot.slane %v825_v31, 2  ;;  %v958_v18 = vadd.f32 %v957_v34, %v956_v62 }
 0x172   :  { %v827_v37 = vadd.f32 %v826_v36, %v825_v31  ;;  %v959_v14 = vrot.slane %v958_v18, 2 }
 0x174   :  { %v828_v51 = vrot.slane %v827_v37, 1  ;;  %v960_v42 = vadd.f32 %v959_v14, %v958_v18 }
 0x176   :  { %v961_v43 = vrot.slane %v960_v42, 1  ;;  %v829_v45 = vadd.f32 %v828_v51, %v827_v37 }
 0x178   :  { %v962_v8 = vadd.f32 %v961_v43, %v960_v42 }
 0x17a   :  { %v964_v44 = vsel %vm963_vm0, %v829_v45, %v962_v8 }
 0x17b   :  { %v966_v48 = vsel %vm965_vm1, %v964_v44, 0.0 }
 0x17c   :  { %967 = vst [vmem:[%s1798_s4] sm:$0xff] %v966_v48 }

// kernel: forward.7
= control target key start
LH: loop header
LB: loop body
LE: loop exit
PB: predicated region body
PF: predicated region fallthrough
CT: control target
= control target key end

     0   :  { %s832_s0 = inlined_call_operand.vmem [shape: f32[512,128], index: 0, kind: input, shape index: {}]   ;;  %s833_s1 = inlined_call_operand.vmem [shape: f32[1,128], index: 1, kind: input, shape index: {}]   ;;  %s834_s2 = inlined_call_operand.vmem [shape: f32[1,128], index: 2, kind: input, shape index: {}]   ;;  %s835_s3 = inlined_call_operand.vmem [shape: f32[512,128], index: 3, kind: output, shape index: {}]  }
   0x1   :  { %v14_v0 = vld [vmem:[%s832_s0] sm:$0xff]  ;;  %v15_v4 = vld [vmem:[%s832_s0 + $0x8] sm:$0xff]  ;;  %v16_v5 = vld [vmem:[%s832_s0 + $0x10] sm:$0xff] }
   0x2   :  { %v316_v1 = vld [vmem:[%s833_s1] ss:$0 sm:$0xff]  ;;  %v17_v6 = vld [vmem:[%s832_s0 + $0x18] sm:$0xff]  ;;  %v19_v11 = vld [vmem:[%s832_s0 + $0x28] sm:$0xff] }
   0x3   :  { %v321_v2 = vld [vmem:[%s834_s2] ss:$0 sm:$0xff]  ;;  %v85_v3 = vmul.f32 %v316_v1, %v14_v0  ;;  %v86_v7 = vmul.f32 %v316_v1, %v15_v4  ;;  %v87_v8 = vmul.f32 %v316_v1, %v16_v5  ;;  %v88_v9 = vmul.f32 %v316_v1, %v17_v6  ;;  %v20_v12 = vld [vmem:[%s832_s0 + $0x30] sm:$0xff]  ;;  %v21_v17 = vld [vmem:[%s832_s0 + $0x38] sm:$0xff] }
   0x4   :  { %v18_v10 = vld [vmem:[%s832_s0 + $0x20] sm:$0xff]  ;;  %v90_v15 = vmul.f32 %v316_v1, %v19_v11  ;;  %v91_v16 = vmul.f32 %v316_v1, %v20_v12  ;;  %v23_v19 = vld [vmem:[%s832_s0 + $0x48] sm:$0xff]  ;;  %v92_v23 = vmul.f32 %v316_v1, %v21_v17  ;;  %v24_v24 = vld [vmem:[%s832_s0 + $0x50] sm:$0xff] }
   0x5   :  { %v156_v13 = vadd.f32 %v321_v2, %v85_v3  ;;  %v89_v14 = vmul.f32 %v316_v1, %v18_v10  ;;  %v22_v18 = vld [vmem:[%s832_s0 + $0x40] sm:$0xff]  ;;  %v157_v20 = vadd.f32 %v321_v2, %v86_v7  ;;  %v158_v21 = vadd.f32 %v321_v2, %v87_v8  ;;  %v25_v25 = vld [vmem:[%s832_s0 + $0x58] sm:$0xff]  ;;  %v27_v31 = vld [vmem:[%s832_s0 + $0x68] sm:$0xff] }
   0x6   :  { %v159_v22 = vadd.f32 %v321_v2, %v88_v9  ;;  %v26_v26 = vld [vmem:[%s832_s0 + $0x60] sm:$0xff]  ;;  %v161_v28 = vadd.f32 %v321_v2, %v90_v15  ;;  %v162_v29 = vadd.f32 %v321_v2, %v91_v16  ;;  %v93_v30 = vmul.f32 %v316_v1, %v22_v18  ;;  %v28_v32 = vld [vmem:[%s832_s0 + $0x70] sm:$0xff]  ;;  %v29_v33 = vld [vmem:[%s832_s0 + $0x78] sm:$0xff] }
   0x7   :  { %220 = vst [vmem:[%s835_s3] sm:$0xff] %v156_v13  ;;  %v160_v27 = vadd.f32 %v321_v2, %v89_v14  ;;  %221 = vst [vmem:[%s835_s3 + $0x8] sm:$0xff] %v157_v20  ;;  %v163_v34 = vadd.f32 %v321_v2, %v92_v23  ;;  %v94_v35 = vmul.f32 %v316_v1, %v23_v19  ;;  %v30_v38 = vld [vmem:[%s832_s0 + $0x80] sm:$0xff]  ;;  %v31_v43 = vld [vmem:[%s832_s0 + $0x88] sm:$0xff] }
   0x8   :  { %222 = vst [vmem:[%s835_s3 + $0x10] sm:$0xff] %v158_v21  ;;  %223 = vst [vmem:[%s835_s3 + $0x18] sm:$0xff] %v159_v22  ;;  %v95_v36 = vmul.f32 %v316_v1, %v24_v24  ;;  %v96_v37 = vmul.f32 %v316_v1, %v25_v25  ;;  %v164_v39 = vadd.f32 %v321_v2, %v93_v30  ;;  %v32_v44 = vld [vmem:[%s832_s0 + $0x90] sm:$0xff]  ;;  %v33_v45 = vld [vmem:[%s832_s0 + $0x98] sm:$0xff] }
   0x9   :  { %224 = vst [vmem:[%s835_s3 + $0x20] sm:$0xff] %v160_v27  ;;  %225 = vst [vmem:[%s835_s3 + $0x28] sm:$0xff] %v161_v28  ;;  %v97_v40 = vmul.f32 %v316_v1, %v26_v26  ;;  %v98_v41 = vmul.f32 %v316_v1, %v27_v31  ;;  %v99_v42 = vmul.f32 %v316_v1, %v28_v32  ;;  %v34_v50 = vld [vmem:[%s832_s0 + $0xa0] sm:$0xff]  ;;  %v35_v51 = vld [vmem:[%s832_s0 + $0xa8] sm:$0xff] }
   0xa   :  { %226 = vst [vmem:[%s835_s3 + $0x30] sm:$0xff] %v162_v29  ;;  %227 = vst [vmem:[%s835_s3 + $0x38] sm:$0xff] %v163_v34  ;;  %v165_v46 = vadd.f32 %v321_v2, %v94_v35  ;;  %v166_v47 = vadd.f32 %v321_v2, %v95_v36  ;;  %v167_v48 = vadd.f32 %v321_v2, %v96_v37  ;;  %v36_v52 = vld [vmem:[%s832_s0 + $0xb0] sm:$0xff]  ;;  %v37_v57 = vld [vmem:[%s832_s0 + $0xb8] sm:$0xff] }
   0xb   :  { %v100_v49 = vmul.f32 %v316_v1, %v29_v33  ;;  %228 = vst [vmem:[%s835_s3 + $0x40] sm:$0xff] %v164_v39  ;;  %v168_v53 = vadd.f32 %v321_v2, %v97_v40  ;;  %v169_v54 = vadd.f32 %v321_v2, %v98_v41  ;;  %v170_v55 = vadd.f32 %v321_v2, %v99_v42  ;;  %v38_v62 = vld [vmem:[%s832_s0 + $0xc0] sm:$0xff]  ;;  %v39_v5 = vld [vmem:[%s832_s0 + $0xc8] sm:$0xff]  ;;  %v40_v6 = vld [vmem:[%s832_s0 + $0xd0] sm:$0xff] }
   0xc   :  { %v101_v56 = vmul.f32 %v316_v1, %v30_v38  ;;  %229 = vst [vmem:[%s835_s3 + $0x48] sm:$0xff] %v165_v46  ;;  %230 = vst [vmem:[%s835_s3 + $0x50] sm:$0xff] %v166_v47  ;;  %v102_v59 = vmul.f32 %v316_v1, %v31_v43  ;;  %v103_v60 = vmul.f32 %v316_v1, %v32_v44  ;;  %v41_v7 = vld [vmem:[%s832_s0 + $0xd8] sm:$0xff]  ;;  %v42_v12 = vld [vmem:[%s832_s0 + $0xe0] sm:$0xff] }
   0xd   :  { %231 = vst [vmem:[%s835_s3 + $0x58] sm:$0xff] %v167_v48  ;;  %v171_v58 = vadd.f32 %v321_v2, %v100_v49  ;;  %v104_v61 = vmul.f32 %v316_v1, %v33_v45  ;;  %232 = vst [vmem:[%s835_s3 + $0x60] sm:$0xff] %v168_v53  ;;  %v105_v0 = vmul.f32 %v316_v1, %v34_v50  ;;  %v43_v13 = vld [vmem:[%s832_s0 + $0xe8] sm:$0xff]  ;;  %v44_v14 = vld [vmem:[%s832_s0 + $0xf0] sm:$0xff] }
   0xe   :  { %233 = vst [vmem:[%s835_s3 + $0x68] sm:$0xff] %v169_v54  ;;  %234 = vst [vmem:[%s835_s3 + $0x70] sm:$0xff] %v170_v55  ;;  %v172_v63 = vadd.f32 %v321_v2, %v101_v56  ;;  %v106_v3 = vmul.f32 %v316_v1, %v35_v51  ;;  %v107_v4 = vmul.f32 %v316_v1, %v36_v52  ;;  %v45_v19 = vld [vmem:[%s832_s0 + $0xf8] sm:$0xff]  ;;  %v46_v24 = vld [vmem:[%s832_s0 + $0x100] sm:$0xff] }
   0xf   :  { %235 = vst [vmem:[%s835_s3 + $0x78] sm:$0xff] %v171_v58  ;;  %v173_v8 = vadd.f32 %v321_v2, %v102_v59  ;;  %v174_v9 = vadd.f32 %v321_v2, %v103_v60  ;;  %v175_v10 = vadd.f32 %v321_v2, %v104_v61  ;;  %v108_v11 = vmul.f32 %v316_v1, %v37_v57  ;;  %v47_v29 = vld [vmem:[%s832_s0 + $0x108] sm:$0xff]  ;;  %v48_v30 = vld [vmem:[%s832_s0 + $0x110] sm:$0xff]  ;;  %v49_v31 = vld [vmem:[%s832_s0 + $0x118] sm:$0xff] }
  0x10   :  { %236 = vst [vmem:[%s835_s3 + $0x80] sm:$0xff] %v172_v63  ;;  %v176_v15 = vadd.f32 %v321_v2, %v105_v0  ;;  %v177_v16 = vadd.f32 %v321_v2, %v106_v3  ;;  %v178_v17 = vadd.f32 %v321_v2, %v107_v4  ;;  %v109_v18 = vmul.f32 %v316_v1, %v38_v62  ;;  %v50_v36 = vld [vmem:[%s832_s0 + $0x120] sm:$0xff]  ;;  %v51_v37 = vld [vmem:[%s832_s0 + $0x128] sm:$0xff]  ;;  %v52_v38 = vld [vmem:[%s832_s0 + $0x130] sm:$0xff] }
  0x11   :  { %237 = vst [vmem:[%s835_s3 + $0x88] sm:$0xff] %v173_v8  ;;  %238 = vst [vmem:[%s835_s3 + $0x90] sm:$0xff] %v174_v9  ;;  %v179_v20 = vadd.f32 %v321_v2, %v108_v11  ;;  %v110_v21 = vmul.f32 %v316_v1, %v39_v5  ;;  %v111_v22 = vmul.f32 %v316_v1, %v40_v6  ;;  %v53_v43 = vld [vmem:[%s832_s0 + $0x138] sm:$0xff]  ;;  %v54_v48 = vld [vmem:[%s832_s0 + $0x140] sm:$0xff] }
  0x12   :  { %239 = vst [vmem:[%s835_s3 + $0x98] sm:$0xff] %v175_v10  ;;  %v112_v23 = vmul.f32 %v316_v1, %v41_v7  ;;  %240 = vst [vmem:[%s835_s3 + $0xa0] sm:$0xff] %v176_v15  ;;  %v180_v25 = vadd.f32 %v321_v2, %v109_v18  ;;  %v113_v26 = vmul.f32 %v316_v1, %v42_v12  ;;  %v55_v53 = vld [vmem:[%s832_s0 + $0x148] sm:$0xff]  ;;  %v56_v54 = vld [vmem:[%s832_s0 + $0x150] sm:$0xff] }
  0x13   :  { %241 = vst [vmem:[%s835_s3 + $0xa8] sm:$0xff] %v177_v16  ;;  %242 = vst [vmem:[%s835_s3 + $0xb0] sm:$0xff] %v178_v17  ;;  %v114_v27 = vmul.f32 %v316_v1, %v43_v13  ;;  %v115_v28 = vmul.f32 %v316_v1, %v44_v14  ;;  %v181_v32 = vadd.f32 %v321_v2, %v110_v21  ;;  %v57_v55 = vld [vmem:[%s832_s0 + $0x158] sm:$0xff]  ;;  %v58_v60 = vld [vmem:[%s832_s0 + $0x160] sm:$0xff] }
  0x14   :  { %243 = vst [vmem:[%s835_s3 + $0xb8] sm:$0xff] %v179_v20  ;;  %v182_v33 = vadd.f32 %v321_v2, %v111_v22  ;;  %v183_v34 = vadd.f32 %v321_v2, %v112_v23  ;;  %v116_v35 = vmul.f32 %v316_v1, %v45_v19  ;;  %244 = vst [vmem:[%s835_s3 + $0xc0] sm:$0xff] %v180_v25  ;;  %v59_v61 = vld [vmem:[%s832_s0 + $0x168] sm:$0xff]  ;;  %v60_v62 = vld [vmem:[%s832_s0 + $0x170] sm:$0xff] }
  0x15   :  { %v184_v39 = vadd.f32 %v321_v2, %v113_v26  ;;  %v185_v40 = vadd.f32 %v321_v2, %v114_v27  ;;  %v186_v41 = vadd.f32 %v321_v2, %v115_v28  ;;  %v117_v42 = vmul.f32 %v316_v1, %v46_v24  ;;  %245 = vst [vmem:[%s835_s3 + $0xc8] sm:$0xff] %v181_v32  ;;  %v61_v5 = vld [vmem:[%s832_s0 + $0x178] sm:$0xff]  ;;  %v62_v10 = vld [vmem:[%s832_s0 + $0x180] sm:$0xff]  ;;  %v63_v15 = vld [vmem:[%s832_s0 + $0x188] sm:$0xff] }
  0x16   :  { %246 = vst [vmem:[%s835_s3 + $0xd0] sm:$0xff] %v182_v33  ;;  %247 = vst [vmem:[%s835_s3 + $0xd8] sm:$0xff] %v183_v34  ;;  %v187_v44 = vadd.f32 %v321_v2, %v116_v35  ;;  %v118_v45 = vmul.f32 %v316_v1, %v47_v29  ;;  %v119_v46 = vmul.f32 %v316_v1, %v48_v30  ;;  %v64_v16 = vld [vmem:[%s832_s0 + $0x190] sm:$0xff]  ;;  %v65_v17 = vld [vmem:[%s832_s0 + $0x198] sm:$0xff] }
  0x17   :  { %v120_v47 = vmul.f32 %v316_v1, %v49_v31  ;;  %248 = vst [vmem:[%s835_s3 + $0xe0] sm:$0xff] %v184_v39  ;;  %249 = vst [vmem:[%s835_s3 + $0xe8] sm:$0xff] %v185_v40  ;;  %v188_v49 = vadd.f32 %v321_v2, %v117_v42  ;;  %v121_v50 = vmul.f32 %v316_v1, %v50_v36  ;;  %v66_v22 = vld [vmem:[%s832_s0 + $0x1a0] sm:$0xff]  ;;  %v67_v23 = vld [vmem:[%s832_s0 + $0x1a8] sm:$0xff] }
  0x18   :  { %250 = vst [vmem:[%s835_s3 + $0xf0] sm:$0xff] %v186_v41  ;;  %v122_v51 = vmul.f32 %v316_v1, %v51_v37  ;;  %v123_v52 = vmul.f32 %v316_v1, %v52_v38  ;;  %251 = vst [vmem:[%s835_s3 + $0xf8] sm:$0xff] %v187_v44  ;;  %v189_v56 = vadd.f32 %v321_v2, %v118_v45  ;;  %v68_v24 = vld [vmem:[%s832_s0 + $0x1b0] sm:$0xff]  ;;  %v69_v29 = vld [vmem:[%s832_s0 + $0x1b8] sm:$0xff] }
  0x19   :  { %v190_v57 = vadd.f32 %v321_v2, %v119_v46  ;;  %v191_v58 = vadd.f32 %v321_v2, %v120_v47  ;;  %v124_v59 = vmul.f32 %v316_v1, %v53_v43  ;;  %252 = vst [vmem:[%s835_s3 + $0x100] sm:$0xff] %v188_v49  ;;  %v192_v63 = vadd.f32 %v321_v2, %v121_v50  ;;  %v70_v34 = vld [vmem:[%s832_s0 + $0x1c0] sm:$0xff]  ;;  %v71_v39 = vld [vmem:[%s832_s0 + $0x1c8] sm:$0xff]  ;;  %v72_v40 = vld [vmem:[%s832_s0 + $0x1d0] sm:$0xff] }
  0x1a   :  { %v193_v0 = vadd.f32 %v321_v2, %v122_v51  ;;  %v194_v3 = vadd.f32 %v321_v2, %v123_v52  ;;  %v125_v4 = vmul.f32 %v316_v1, %v54_v48  ;;  %253 = vst [vmem:[%s835_s3 + $0x108] sm:$0xff] %v189_v56  ;;  %v126_v7 = vmul.f32 %v316_v1, %v55_v53  ;;  %v73_v41 = vld [vmem:[%s832_s0 + $0x1d8] sm:$0xff]  ;;  %v74_v46 = vld [vmem:[%s832_s0 + $0x1e0] sm:$0xff]  ;;  %v75_v47 = vld [vmem:[%s832_s0 + $0x1e8] sm:$0xff] }
  0x1b   :  { %254 = vst [vmem:[%s835_s3 + $0x110] sm:$0xff] %v190_v57  ;;  %255 = vst [vmem:[%s835_s3 + $0x118] sm:$0xff] %v191_v58  ;;  %v195_v6 = vadd.f32 %v321_v2, %v124_v59  ;;  %v127_v8 = vmul.f32 %v316_v1, %v56_v54  ;;  %v128_v9 = vmul.f32 %v316_v1, %v57_v55  ;;  %v76_v48 = vld [vmem:[%s832_s0 + $0x1f0] sm:$0xff]  ;;  %v77_v53 = vld [vmem:[%s832_s0 + $0x1f8] sm:$0xff] }
  0x1c   :  { %256 = vst [vmem:[%s835_s3 + $0x120] sm:$0xff] %v192_v63  ;;  %257 = vst [vmem:[%s835_s3 + $0x128] sm:$0xff] %v193_v0  ;;  %v196_v11 = vadd.f32 %v321_v2, %v125_v4  ;;  %v129_v12 = vmul.f32 %v316_v1, %v58_v60  ;;  %v130_v13 = vmul.f32 %v316_v1, %v59_v61 }
  0x1d   :  { %258 = vst [vmem:[%s835_s3 + $0x130] sm:$0xff] %v194_v3  ;;  %v131_v14 = vmul.f32 %v316_v1, %v60_v62  ;;  %259 = vst [vmem:[%s835_s3 + $0x138] sm:$0xff] %v195_v6  ;;  %v197_v18 = vadd.f32 %v321_v2, %v126_v7  ;;  %v198_v19 = vadd.f32 %v321_v2, %v127_v8 }
  0x1e   :  { %v199_v20 = vadd.f32 %v321_v2, %v128_v9  ;;  %v132_v21 = vmul.f32 %v316_v1, %v61_v5  ;;  %260 = vst [vmem:[%s835_s3 + $0x140] sm:$0xff] %v196_v11  ;;  %v200_v25 = vadd.f32 %v321_v2, %v129_v12  ;;  %v201_v26 = vadd.f32 %v321_v2, %v130_v13 }
  0x1f   :  { %v202_v27 = vadd.f32 %v321_v2, %v131_v14  ;;  %v133_v28 = vmul.f32 %v316_v1, %v62_v10  ;;  %261 = vst [vmem:[%s835_s3 + $0x148] sm:$0xff] %v197_v18  ;;  %262 = vst [vmem:[%s835_s3 + $0x150] sm:$0xff] %v198_v19  ;;  %v134_v31 = vmul.f32 %v316_v1, %v63_v15 }
  0x20   :  { %263 = vst [vmem:[%s835_s3 + $0x158] sm:$0xff] %v199_v20  ;;  %v203_v30 = vadd.f32 %v321_v2, %v132_v21  ;;  %v135_v32 = vmul.f32 %v316_v1, %v64_v16  ;;  %v136_v33 = vmul.f32 %v316_v1, %v65_v17  ;;  %264 = vst [vmem:[%s835_s3 + $0x160] sm:$0xff] %v200_v25 }
  0x21   :  { %265 = vst [vmem:[%s835_s3 + $0x168] sm:$0xff] %v201_v26  ;;  %266 = vst [vmem:[%s835_s3 + $0x170] sm:$0xff] %v202_v27  ;;  %v204_v35 = vadd.f32 %v321_v2, %v133_v28  ;;  %v137_v36 = vmul.f32 %v316_v1, %v66_v22  ;;  %v138_v37 = vmul.f32 %v316_v1, %v67_v23 }
  0x22   :  { %v139_v38 = vmul.f32 %v316_v1, %v68_v24  ;;  %267 = vst [vmem:[%s835_s3 + $0x178] sm:$0xff] %v203_v30  ;;  %v205_v42 = vadd.f32 %v321_v2, %v134_v31  ;;  %v206_v43 = vadd.f32 %v321_v2, %v135_v32  ;;  %v207_v44 = vadd.f32 %v321_v2, %v136_v33 }
  0x23   :  { %v140_v45 = vmul.f32 %v316_v1, %v69_v29  ;;  %268 = vst [vmem:[%s835_s3 + $0x180] sm:$0xff] %v204_v35  ;;  %v208_v49 = vadd.f32 %v321_v2, %v137_v36  ;;  %v209_v50 = vadd.f32 %v321_v2, %v138_v37  ;;  %v141_v52 = vmul.f32 %v316_v1, %v70_v34 }
  0x24   :  { %v210_v51 = vadd.f32 %v321_v2, %v139_v38  ;;  %269 = vst [vmem:[%s835_s3 + $0x188] sm:$0xff] %v205_v42  ;;  %270 = vst [vmem:[%s835_s3 + $0x190] sm:$0xff] %v206_v43  ;;  %v142_v55 = vmul.f32 %v316_v1, %v71_v39  ;;  %v143_v56 = vmul.f32 %v316_v1, %v72_v40 }
  0x25   :  { %271 = vst [vmem:[%s835_s3 + $0x198] sm:$0xff] %v207_v44  ;;  %v211_v54 = vadd.f32 %v321_v2, %v140_v45  ;;  %v144_v57 = vmul.f32 %v316_v1, %v73_v41  ;;  %272 = vst [vmem:[%s835_s3 + $0x1a0] sm:$0xff] %v208_v49  ;;  %v212_v58 = vadd.f32 %v321_v2, %v141_v52 }
  0x26   :  { %273 = vst [vmem:[%s835_s3 + $0x1a8] sm:$0xff] %v209_v50  ;;  %274 = vst [vmem:[%s835_s3 + $0x1b0] sm:$0xff] %v210_v51  ;;  %v145_v59 = vmul.f32 %v316_v1, %v74_v46  ;;  %v146_v60 = vmul.f32 %v316_v1, %v75_v47  ;;  %v147_v61 = vmul.f32 %v316_v1, %v76_v48 }
  0x27   :  { %275 = vst [vmem:[%s835_s3 + $0x1b8] sm:$0xff] %v211_v54  ;;  %v213_v62 = vadd.f32 %v321_v2, %v142_v55  ;;  %v214_v63 = vadd.f32 %v321_v2, %v143_v56  ;;  %v215_v0 = vadd.f32 %v321_v2, %v144_v57  ;;  %v148_v3 = vmul.f32 %v316_v1, %v77_v53 }
  0x28   :  { %276 = vst [vmem:[%s835_s3 + $0x1c0] sm:$0xff] %v212_v58  ;;  %v216_v4 = vadd.f32 %v321_v2, %v145_v59  ;;  %v217_v5 = vadd.f32 %v321_v2, %v146_v60  ;;  %v218_v6 = vadd.f32 %v321_v2, %v147_v61 }
  0x29   :  { %277 = vst [vmem:[%s835_s3 + $0x1c8] sm:$0xff] %v213_v62  ;;  %278 = vst [vmem:[%s835_s3 + $0x1d0] sm:$0xff] %v214_v63  ;;  %v219_v1 = vadd.f32 %v321_v2, %v148_v3 }
  0x2a   :  { %279 = vst [vmem:[%s835_s3 + $0x1d8] sm:$0xff] %v215_v0  ;;  %280 = vst [vmem:[%s835_s3 + $0x1e0] sm:$0xff] %v216_v4 }
  0x2b   :  { %281 = vst [vmem:[%s835_s3 + $0x1e8] sm:$0xff] %v217_v5  ;;  %282 = vst [vmem:[%s835_s3 + $0x1f0] sm:$0xff] %v218_v6 }
  0x2c   :  { %283 = vst [vmem:[%s835_s3 + $0x1f8] sm:$0xff] %v219_v1 }

</bundles_post_ra>
